<compile_context>
chip_gen: v6e
topology: v6e:2x2x1
jax: 0.10.0
libtpu: 0.0.40
codegen_flags: <defaults>
</compile_context>

<pallas_src>
import jax
import jax.numpy as jnp
from jax.experimental import pallas as pl
from jax.experimental.pallas import tpu as pltpu


def mu_kernel(x_ref, w1_ref, b1_ref, w2_ref, b2_ref, w3_ref, b3_ref, o_ref):
    # x_ref: (tb, S)   w1_ref: (S, H)   b1_ref: (1, H)
    # w2_ref: (H, H)   b2_ref: (1, H)
    # w3_ref: (H, F)   b3_ref: (1, F)   o_ref: (tb, F)
    cd = w1_ref.dtype                      # MXU input dtype (f32 or bf16)
    x = x_ref[...].astype(cd)

    # Layer 1: MXU matmul (f32 accumulation) + f32 bias + relu on the VPU.
    z = jnp.dot(x, w1_ref[...], preferred_element_type=jnp.float32)
    z = jnp.maximum(z + b1_ref[...], 0.0)

    # Layer 2.
    z = jnp.dot(z.astype(cd), w2_ref[...], preferred_element_type=jnp.float32)
    z = jnp.maximum(z + b2_ref[...], 0.0)

    # Layer 3 + sigmoid.  exp and the approximate reciprocal both run on the
    # EUP (their own bundle slot), so the sigmoid is nearly VALU-free.
    z = jnp.dot(z.astype(cd), w3_ref[...], preferred_element_type=jnp.float32)
    z = z + b3_ref[...]
    o_ref[...] = pl.reciprocal(1.0 + jnp.exp(-z), approx=True).astype(o_ref.dtype)


def prepare_mu_params(w1, b1, w2, b2, w3, b3, param_dtype=jnp.float32):
    """One-time conversion of PyTorch nn.Linear params (weights in (out, in)
    layout) into the kernel's lane-dense (in, out) layout.

    Call this ONCE at model-load time, not per forward call — otherwise every
    call pays an extra HBM read+write transpose pass over ~all the weights,
    which roughly doubles wall time for this weight-bandwidth-bound MLP.

    param_dtype=jnp.bfloat16 halves weight HBM traffic and runs the MXU at its
    native bf16 rate (recommended on v6e/v7x); biases stay f32 so the
    relu/sigmoid epilogue stays in f32.
    """
    return (
        jnp.asarray(w1).T.astype(param_dtype),               # (S, H)
        jnp.asarray(b1).reshape(1, -1).astype(jnp.float32),  # (1, H)
        jnp.asarray(w2).T.astype(param_dtype),               # (H, H)
        jnp.asarray(b2).reshape(1, -1).astype(jnp.float32),  # (1, H)
        jnp.asarray(w3).T.astype(param_dtype),               # (H, F)
        jnp.asarray(b3).reshape(1, -1).astype(jnp.float32),  # (1, F)
    )


def _pick_tb(B, cap=512):
    """Batch tile.

    Small batches -> a single grid step with tb = B: the weights are resident
    (grid-invariant) so extra grid steps are pure ~0.35us/step overhead on
    single-TC parts, and tiny tb wastes MXU rows.
    Large batches -> multiples of 128 (full MXU rows) up to `cap`, preferring
    a divisor of B; "parallel" grid steps then shard across TensorCores on
    v7x megacore.
    """
    if B <= cap:
        return B
    tb = cap - (cap % 128)
    while tb > 128 and B % tb != 0:
        tb -= 128
    return max(tb, 128)


def _vmem_limit_bytes(S, H, F, tb, param_bytes, act_bytes=4):
    """Explicit scoped-VMEM budget for the fused kernel.

    Resident single-buffered weights/biases + double-buffered activation
    tiles, with 50% headroom.  Floor 32 MiB; cap 96 MiB (fits v5e/v6e's
    128 MiB physical; on v7x (64 MiB per TC) shapes that need more than
    ~48 MiB should switch to bf16 weights).
    """
    weights = (S * H + H * H + H * F) * param_bytes + (2 * H + F) * 4
    acts = 2 * (tb * S + tb * F) * act_bytes
    need = weights + acts
    # TODO(synk): if the three weight matrices alone exceed ~48 MiB (e.g.
    # f32 hidden_dim > ~2300), add an output-column tiling grid axis instead
    # of keeping all weights resident (required to fit v7x's 64 MiB VMEM).
    return int(min(max(need + need // 2, 32 * 1024 * 1024), 96 * 1024 * 1024))


def mu_forward(state, params, *, tb=None):
    """state: (B, S) f32.  params: output of prepare_mu_params.
    Returns z_mu: (B, F) in state.dtype."""
    w1_t, b1_r, w2_t, b2_r, w3_t, b3_r = params
    B, S = state.shape
    H = w1_t.shape[1]
    F = w3_t.shape[1]
    if tb is None:
        tb = _pick_tb(B)
    grid = (pl.cdiv(B, tb),)
    param_bytes = jnp.dtype(w1_t.dtype).itemsize

    cost = pl.CostEstimate(
        flops=2 * B * (S * H + H * H + H * F),
        transcendentals=2 * B * F,  # exp + reciprocal per output element
        bytes_accessed=(B * S + B * F) * state.dtype.itemsize
        + (S * H + H * H + H * F) * param_bytes
        + (2 * H + F) * 4,
    )

    def build(single_buffer_weights):
        # Grid-invariant operands: one resident buffer (no double-buffering).
        w_mode = (
            dict(pipeline_mode=pl.Buffered(1)) if single_buffer_weights else {}
        )
        in_specs = [
            pl.BlockSpec((tb, S), lambda i: (i, 0)),              # state tile
            pl.BlockSpec((S, H), lambda i: (0, 0), **w_mode),     # W1^T
            pl.BlockSpec((1, H), lambda i: (0, 0), **w_mode),     # b1
            pl.BlockSpec((H, H), lambda i: (0, 0), **w_mode),     # W2^T
            pl.BlockSpec((1, H), lambda i: (0, 0), **w_mode),     # b2
            pl.BlockSpec((H, F), lambda i: (0, 0), **w_mode),     # W3^T
            pl.BlockSpec((1, F), lambda i: (0, 0), **w_mode),     # b3
        ]
        return pl.pallas_call(
            mu_kernel,
            out_shape=jax.ShapeDtypeStruct((B, F), state.dtype),
            grid_spec=pltpu.PrefetchScalarGridSpec(
                num_scalar_prefetch=0,
                grid=grid,
                in_specs=in_specs,
                # Lane-dense output block (F is a multiple of 128 in practice)
                # -> unmasked stores.
                out_specs=pl.BlockSpec((tb, F), lambda i: (i, 0)),
            ),
            compiler_params=pltpu.CompilerParams(
                dimension_semantics=("parallel",),
                vmem_limit_bytes=_vmem_limit_bytes(S, H, F, tb, param_bytes),
            ),
            cost_estimate=cost,
        )

    args = (state, w1_t, b1_r, w2_t, b2_r, w3_t, b3_r)
    try:
        return build(True)(*args)
    except Exception:
        # Buffered(1) pipeline_mode not supported by this JAX build; fall back
        # to default double-buffering (correct, just uses more VMEM).
        return build(False)(*args)


if __name__ == "__main__":
    # Small shapes consistent with the module (defaults are 1024/1024).
    batch = 16
    state_dim = 64
    hidden_dim = 256
    feature_dim = 256

    key = jax.random.PRNGKey(0)
    ks = jax.random.split(key, 7)

    def linear_init(kw, kb, fan_in, fan_out):
        # nn.Linear default init: U(-1/sqrt(fan_in), 1/sqrt(fan_in))
        bound = 1.0 / (fan_in ** 0.5)
        w = jax.random.uniform(kw, (fan_out, fan_in), jnp.float32, -bound, bound)
        b = jax.random.uniform(kb, (fan_out,), jnp.float32, -bound, bound)
        return w, b

    w1, b1 = linear_init(ks[0], ks[1], state_dim, hidden_dim)
    w2, b2 = linear_init(ks[2], ks[3], hidden_dim, hidden_dim)
    w3, b3 = linear_init(ks[4], ks[5], hidden_dim, feature_dim)
    state = jax.random.normal(ks[6], (batch, state_dim), jnp.float32)

    # Plain-JAX reference (same math as the PyTorch forward).
    z = jnp.maximum(state @ w1.T + b1, 0.0)
    z = jnp.maximum(z @ w2.T + b2, 0.0)
    z_ref = 1.0 / (1.0 + jnp.exp(-(z @ w3.T + b3)))

    # f32 weights (exact path).  Params prepared ONCE, outside the call.
    params_f32 = prepare_mu_params(w1, b1, w2, b2, w3, b3, jnp.float32)
    z_mu = mu_forward(state, params_f32)
    jax.block_until_ready(z_mu)
    assert z_mu.shape == (batch, feature_dim), z_mu.shape
    assert jnp.allclose(z_mu, z_ref, atol=2e-3, rtol=2e-3), "f32 mismatch vs reference"

    # bf16 weights (v6e/v7x bandwidth path); f32 accumulation + f32 epilogue.
    params_bf16 = prepare_mu_params(w1, b1, w2, b2, w3, b3, jnp.bfloat16)
    z_mu_bf16 = mu_forward(state, params_bf16)
    jax.block_until_ready(z_mu_bf16)
    assert jnp.allclose(z_mu_bf16, z_ref, atol=5e-2, rtol=5e-2), "bf16 mismatch vs reference"

    print("KERNEL_OK")
</pallas_src>

<mosaic_0001>
module attributes {stable_mosaic.version = 11 : i64} {
  func.func @mu_kernel(%arg0: i32, %arg1: memref<16x64xf32, #tpu.memory_space<vmem>>, %arg2: memref<64x256xf32, #tpu.memory_space<vmem>>, %arg3: memref<1x256xf32, #tpu.memory_space<vmem>>, %arg4: memref<256x256xf32, #tpu.memory_space<vmem>>, %arg5: memref<1x256xf32, #tpu.memory_space<vmem>>, %arg6: memref<256x256xf32, #tpu.memory_space<vmem>>, %arg7: memref<1x256xf32, #tpu.memory_space<vmem>>, %arg8: memref<16x256xf32, #tpu.memory_space<vmem>>) attributes {dimension_semantics = [#tpu.dimension_semantics<parallel>], iteration_bounds = array<i64: 1>, scalar_prefetch = 0 : i64, scratch_operands = 0 : i64, tpu.core_type = #tpu.core_type<tc>, window_params = [{transform_indices = @transform_0, window_bounds = array<i64: 16, 64>}, {pipeline_mode = #tpu.pipeline_mode<synchronous>, transform_indices = @transform_1, window_bounds = array<i64: 64, 256>}, {pipeline_mode = #tpu.pipeline_mode<synchronous>, transform_indices = @transform_2, window_bounds = array<i64: 1, 256>}, {pipeline_mode = #tpu.pipeline_mode<synchronous>, transform_indices = @transform_3, window_bounds = array<i64: 256, 256>}, {pipeline_mode = #tpu.pipeline_mode<synchronous>, transform_indices = @transform_4, window_bounds = array<i64: 1, 256>}, {pipeline_mode = #tpu.pipeline_mode<synchronous>, transform_indices = @transform_5, window_bounds = array<i64: 256, 256>}, {pipeline_mode = #tpu.pipeline_mode<synchronous>, transform_indices = @transform_6, window_bounds = array<i64: 1, 256>}, {transform_indices = @transform_7, window_bounds = array<i64: 16, 256>}]} {
    %c0 = arith.constant 0 : index
    %c0_0 = arith.constant 0 : index
    %0 = vector.load %arg1[%c0, %c0_0] : memref<16x64xf32, #tpu.memory_space<vmem>>, vector<16x64xf32>
    %c0_1 = arith.constant 0 : index
    %c0_2 = arith.constant 0 : index
    %1 = vector.load %arg2[%c0_1, %c0_2] : memref<64x256xf32, #tpu.memory_space<vmem>>, vector<64x256xf32>
    %cst = arith.constant dense<0.000000e+00> : vector<16x256xf32>
    %2 = tpu.matmul %0, %1, %cst {dimension_numbers = #tpu.dot_dimension_numbers<[1], [0], [0], [1], [0, 0, 1, 1], [], []>} : vector<16x64xf32>, vector<64x256xf32>, vector<16x256xf32> -> vector<16x256xf32>
    %c0_3 = arith.constant 0 : index
    %c0_4 = arith.constant 0 : index
    %3 = vector.load %arg3[%c0_3, %c0_4] : memref<1x256xf32, #tpu.memory_space<vmem>>, vector<1x256xf32>
    %4 = vector.broadcast %3 : vector<1x256xf32> to vector<16x256xf32>
    %5 = arith.addf %2, %4 : vector<16x256xf32>
    %cst_5 = arith.constant 0.000000e+00 : f32
    %6 = vector.broadcast %cst_5 : f32 to vector<16x256xf32>
    %7 = arith.maximumf %5, %6 : vector<16x256xf32>
    %c0_6 = arith.constant 0 : index
    %c0_7 = arith.constant 0 : index
    %8 = vector.load %arg4[%c0_6, %c0_7] : memref<256x256xf32, #tpu.memory_space<vmem>>, vector<256x256xf32>
    %cst_8 = arith.constant dense<0.000000e+00> : vector<16x256xf32>
    %9 = tpu.matmul %7, %8, %cst_8 {dimension_numbers = #tpu.dot_dimension_numbers<[1], [0], [0], [1], [0, 0, 1, 1], [], []>} : vector<16x256xf32>, vector<256x256xf32>, vector<16x256xf32> -> vector<16x256xf32>
    %c0_9 = arith.constant 0 : index
    %c0_10 = arith.constant 0 : index
    %10 = vector.load %arg5[%c0_9, %c0_10] : memref<1x256xf32, #tpu.memory_space<vmem>>, vector<1x256xf32>
    %11 = vector.broadcast %10 : vector<1x256xf32> to vector<16x256xf32>
    %12 = arith.addf %9, %11 : vector<16x256xf32>
    %cst_11 = arith.constant 0.000000e+00 : f32
    %13 = vector.broadcast %cst_11 : f32 to vector<16x256xf32>
    %14 = arith.maximumf %12, %13 : vector<16x256xf32>
    %c0_12 = arith.constant 0 : index
    %c0_13 = arith.constant 0 : index
    %15 = vector.load %arg6[%c0_12, %c0_13] : memref<256x256xf32, #tpu.memory_space<vmem>>, vector<256x256xf32>
    %cst_14 = arith.constant dense<0.000000e+00> : vector<16x256xf32>
    %16 = tpu.matmul %14, %15, %cst_14 {dimension_numbers = #tpu.dot_dimension_numbers<[1], [0], [0], [1], [0, 0, 1, 1], [], []>} : vector<16x256xf32>, vector<256x256xf32>, vector<16x256xf32> -> vector<16x256xf32>
    %c0_15 = arith.constant 0 : index
    %c0_16 = arith.constant 0 : index
    %17 = vector.load %arg7[%c0_15, %c0_16] : memref<1x256xf32, #tpu.memory_space<vmem>>, vector<1x256xf32>
    %18 = vector.broadcast %17 : vector<1x256xf32> to vector<16x256xf32>
    %19 = arith.addf %16, %18 : vector<16x256xf32>
    %cst_17 = arith.constant 0.000000e+00 : f32
    %20 = vector.broadcast %cst_17 : f32 to vector<16x256xf32>
    %21 = arith.subf %20, %19 : vector<16x256xf32>
    %22 = math.exp %21 : vector<16x256xf32>
    %cst_18 = arith.constant 1.000000e+00 : f32
    %23 = vector.broadcast %cst_18 : f32 to vector<16x256xf32>
    %24 = arith.addf %23, %22 : vector<16x256xf32>
    %25 = tpu.reciprocal %24 {approx = true} : vector<16x256xf32> -> vector<16x256xf32>
    %c0_19 = arith.constant 0 : index
    %c0_20 = arith.constant 0 : index
    %26 = vector.load %arg8[%c0_19, %c0_20] : memref<16x256xf32, #tpu.memory_space<vmem>>, vector<16x256xf32>
    tpu.vector_store %arg8[%c0_19, %c0_20], %25 {strides = array<i32>} : memref<16x256xf32, #tpu.memory_space<vmem>>, vector<16x256xf32>,
    return
  }
  func.func @transform_0(%arg0: i32) -> (i32, i32) {
    %c0_i32 = arith.constant 0 : i32
    %c0_i32_0 = arith.constant 0 : i32
    return %arg0, %c0_i32 : i32, i32
  }
  func.func @transform_1(%arg0: i32) -> (i32, i32) {
    %c0_i32 = arith.constant 0 : i32
    %c0_i32_0 = arith.constant 0 : i32
    %c0_i32_1 = arith.constant 0 : i32
    return %c0_i32, %c0_i32_0 : i32, i32
  }
  func.func @transform_2(%arg0: i32) -> (i32, i32) {
    %c0_i32 = arith.constant 0 : i32
    %c0_i32_0 = arith.constant 0 : i32
    %c0_i32_1 = arith.constant 0 : i32
    return %c0_i32, %c0_i32_0 : i32, i32
  }
  func.func @transform_3(%arg0: i32) -> (i32, i32) {
    %c0_i32 = arith.constant 0 : i32
    %c0_i32_0 = arith.constant 0 : i32
    %c0_i32_1 = arith.constant 0 : i32
    return %c0_i32, %c0_i32_0 : i32, i32
  }
  func.func @transform_4(%arg0: i32) -> (i32, i32) {
    %c0_i32 = arith.constant 0 : i32
    %c0_i32_0 = arith.constant 0 : i32
    %c0_i32_1 = arith.constant 0 : i32
    return %c0_i32, %c0_i32_0 : i32, i32
  }
  func.func @transform_5(%arg0: i32) -> (i32, i32) {
    %c0_i32 = arith.constant 0 : i32
    %c0_i32_0 = arith.constant 0 : i32
    %c0_i32_1 = arith.constant 0 : i32
    return %c0_i32, %c0_i32_0 : i32, i32
  }
  func.func @transform_6(%arg0: i32) -> (i32, i32) {
    %c0_i32 = arith.constant 0 : i32
    %c0_i32_0 = arith.constant 0 : i32
    %c0_i32_1 = arith.constant 0 : i32
    return %c0_i32, %c0_i32_0 : i32, i32
  }
  func.func @transform_7(%arg0: i32) -> (i32, i32) {
    %c0_i32 = arith.constant 0 : i32
    %c0_i32_0 = arith.constant 0 : i32
    return %arg0, %c0_i32 : i32, i32
  }
}

module attributes {stable_mosaic.version = 11 : i64} {
  func.func @mu_kernel(%arg0: i32, %arg1: memref<16x64xf32, #tpu.memory_space<vmem>>, %arg2: memref<64x256xf32, #tpu.memory_space<vmem>>, %arg3: memref<1x256xf32, #tpu.memory_space<vmem>>, %arg4: memref<256x256xf32, #tpu.memory_space<vmem>>, %arg5: memref<1x256xf32, #tpu.memory_space<vmem>>, %arg6: memref<256x256xf32, #tpu.memory_space<vmem>>, %arg7: memref<1x256xf32, #tpu.memory_space<vmem>>, %arg8: memref<16x256xf32, #tpu.memory_space<vmem>>) attributes {dimension_semantics = [#tpu.dimension_semantics<parallel>], iteration_bounds = array<i64: 1>, scalar_prefetch = 0 : i64, scratch_operands = 0 : i64, tpu.core_type = #tpu.core_type<tc>, window_params = [{transform_indices = @transform_0, window_bounds = array<i64: 16, 64>}, {pipeline_mode = #tpu.pipeline_mode<synchronous>, transform_indices = @transform_1, window_bounds = array<i64: 64, 256>}, {pipeline_mode = #tpu.pipeline_mode<synchronous>, transform_indices = @transform_2, window_bounds = array<i64: 1, 256>}, {pipeline_mode = #tpu.pipeline_mode<synchronous>, transform_indices = @transform_3, window_bounds = array<i64: 256, 256>}, {pipeline_mode = #tpu.pipeline_mode<synchronous>, transform_indices = @transform_4, window_bounds = array<i64: 1, 256>}, {pipeline_mode = #tpu.pipeline_mode<synchronous>, transform_indices = @transform_5, window_bounds = array<i64: 256, 256>}, {pipeline_mode = #tpu.pipeline_mode<synchronous>, transform_indices = @transform_6, window_bounds = array<i64: 1, 256>}, {transform_indices = @transform_7, window_bounds = array<i64: 16, 256>}]} {
    %c0 = arith.constant 0 : index
    %c0_0 = arith.constant 0 : index
    %0 = vector.load %arg1[%c0, %c0_0] : memref<16x64xf32, #tpu.memory_space<vmem>>, vector<16x64xf32>
    %c0_1 = arith.constant 0 : index
    %c0_2 = arith.constant 0 : index
    %1 = vector.load %arg2[%c0_1, %c0_2] : memref<64x256xf32, #tpu.memory_space<vmem>>, vector<64x256xf32>
    %cst = arith.constant dense<0.000000e+00> : vector<16x256xf32>
    %2 = tpu.matmul %0, %1, %cst {dimension_numbers = #tpu.dot_dimension_numbers<[1], [0], [0], [1], [0, 0, 1, 1], [], []>} : vector<16x64xf32>, vector<64x256xf32>, vector<16x256xf32> -> vector<16x256xf32>
    %c0_3 = arith.constant 0 : index
    %c0_4 = arith.constant 0 : index
    %3 = vector.load %arg3[%c0_3, %c0_4] : memref<1x256xf32, #tpu.memory_space<vmem>>, vector<1x256xf32>
    %4 = vector.broadcast %3 : vector<1x256xf32> to vector<16x256xf32>
    %5 = arith.addf %2, %4 : vector<16x256xf32>
    %cst_5 = arith.constant 0.000000e+00 : f32
    %6 = vector.broadcast %cst_5 : f32 to vector<16x256xf32>
    %7 = arith.maximumf %5, %6 : vector<16x256xf32>
    %c0_6 = arith.constant 0 : index
    %c0_7 = arith.constant 0 : index
    %8 = vector.load %arg4[%c0_6, %c0_7] : memref<256x256xf32, #tpu.memory_space<vmem>>, vector<256x256xf32>
    %cst_8 = arith.constant dense<0.000000e+00> : vector<16x256xf32>
    %9 = tpu.matmul %7, %8, %cst_8 {dimension_numbers = #tpu.dot_dimension_numbers<[1], [0], [0], [1], [0, 0, 1, 1], [], []>} : vector<16x256xf32>, vector<256x256xf32>, vector<16x256xf32> -> vector<16x256xf32>
    %c0_9 = arith.constant 0 : index
    %c0_10 = arith.constant 0 : index
    %10 = vector.load %arg5[%c0_9, %c0_10] : memref<1x256xf32, #tpu.memory_space<vmem>>, vector<1x256xf32>
    %11 = vector.broadcast %10 : vector<1x256xf32> to vector<16x256xf32>
    %12 = arith.addf %9, %11 : vector<16x256xf32>
    %cst_11 = arith.constant 0.000000e+00 : f32
    %13 = vector.broadcast %cst_11 : f32 to vector<16x256xf32>
    %14 = arith.maximumf %12, %13 : vector<16x256xf32>
    %c0_12 = arith.constant 0 : index
    %c0_13 = arith.constant 0 : index
    %15 = vector.load %arg6[%c0_12, %c0_13] : memref<256x256xf32, #tpu.memory_space<vmem>>, vector<256x256xf32>
    %cst_14 = arith.constant dense<0.000000e+00> : vector<16x256xf32>
    %16 = tpu.matmul %14, %15, %cst_14 {dimension_numbers = #tpu.dot_dimension_numbers<[1], [0], [0], [1], [0, 0, 1, 1], [], []>} : vector<16x256xf32>, vector<256x256xf32>, vector<16x256xf32> -> vector<16x256xf32>
    %c0_15 = arith.constant 0 : index
    %c0_16 = arith.constant 0 : index
    %17 = vector.load %arg7[%c0_15, %c0_16] : memref<1x256xf32, #tpu.memory_space<vmem>>, vector<1x256xf32>
    %18 = vector.broadcast %17 : vector<1x256xf32> to vector<16x256xf32>
    %19 = arith.addf %16, %18 : vector<16x256xf32>
    %cst_17 = arith.constant 0.000000e+00 : f32
    %20 = vector.broadcast %cst_17 : f32 to vector<16x256xf32>
    %21 = arith.subf %20, %19 : vector<16x256xf32>
    %22 = math.exp %21 : vector<16x256xf32>
    %cst_18 = arith.constant 1.000000e+00 : f32
    %23 = vector.broadcast %cst_18 : f32 to vector<16x256xf32>
    %24 = arith.addf %23, %22 : vector<16x256xf32>
    %25 = tpu.reciprocal %24 {approx = true} : vector<16x256xf32> -> vector<16x256xf32>
    %c0_19 = arith.constant 0 : index
    %c0_20 = arith.constant 0 : index
    %26 = vector.load %arg8[%c0_19, %c0_20] : memref<16x256xf32, #tpu.memory_space<vmem>>, vector<16x256xf32>
    tpu.vector_store %arg8[%c0_19, %c0_20], %25 {strides = array<i32>} : memref<16x256xf32, #tpu.memory_space<vmem>>, vector<16x256xf32>,
    return
  }
  func.func @transform_0(%arg0: i32) -> (i32, i32) {
    %c0_i32 = arith.constant 0 : i32
    %c0_i32_0 = arith.constant 0 : i32
    return %arg0, %c0_i32 : i32, i32
  }
  func.func @transform_1(%arg0: i32) -> (i32, i32) {
    %c0_i32 = arith.constant 0 : i32
    %c0_i32_0 = arith.constant 0 : i32
    %c0_i32_1 = arith.constant 0 : i32
    return %c0_i32, %c0_i32_0 : i32, i32
  }
  func.func @transform_2(%arg0: i32) -> (i32, i32) {
    %c0_i32 = arith.constant 0 : i32
    %c0_i32_0 = arith.constant 0 : i32
    %c0_i32_1 = arith.constant 0 : i32
    return %c0_i32, %c0_i32_0 : i32, i32
  }
  func.func @transform_3(%arg0: i32) -> (i32, i32) {
    %c0_i32 = arith.constant 0 : i32
    %c0_i32_0 = arith.constant 0 : i32
    %c0_i32_1 = arith.constant 0 : i32
    return %c0_i32, %c0_i32_0 : i32, i32
  }
  func.func @transform_4(%arg0: i32) -> (i32, i32) {
    %c0_i32 = arith.constant 0 : i32
    %c0_i32_0 = arith.constant 0 : i32
    %c0_i32_1 = arith.constant 0 : i32
    return %c0_i32, %c0_i32_0 : i32, i32
  }
  func.func @transform_5(%arg0: i32) -> (i32, i32) {
    %c0_i32 = arith.constant 0 : i32
    %c0_i32_0 = arith.constant 0 : i32
    %c0_i32_1 = arith.constant 0 : i32
    return %c0_i32, %c0_i32_0 : i32, i32
  }
  func.func @transform_6(%arg0: i32) -> (i32, i32) {
    %c0_i32 = arith.constant 0 : i32
    %c0_i32_0 = arith.constant 0 : i32
    %c0_i32_1 = arith.constant 0 : i32
    return %c0_i32, %c0_i32_0 : i32, i32
  }
  func.func @transform_7(%arg0: i32) -> (i32, i32) {
    %c0_i32 = arith.constant 0 : i32
    %c0_i32_0 = arith.constant 0 : i32
    return %arg0, %c0_i32 : i32, i32
  }
}

</mosaic_0001>

<bundles_post_ra>
// kernel: tpu_custom_call.1
= control target key start
LH: loop header
LB: loop body
LE: loop exit
PB: predicated region body
PF: predicated region fallthrough
CT: control target
= control target key end

     0   :  { %12 = vsyncpa [#allocation3], 0  ;;  %s777_s0 = inlined_call_operand.hbm [shape: f32[16,64], index: 0, kind: input, shape index: {}]   ;;  %s778_s1 = inlined_call_operand.hbm [shape: f32[64,256], index: 1, kind: input, shape index: {}]   ;;  %s779_s2 = inlined_call_operand.vmem [shape: f32[1,256], index: 2, kind: input, shape index: {}]   ;;  %s780_s3 = inlined_call_operand.hbm [shape: f32[256,256], index: 3, kind: input, shape index: {}]   ;;  %s781_s4 = inlined_call_operand.vmem [shape: f32[1,256], index: 4, kind: input, shape index: {}]   ;;  %s782_s5 = inlined_call_operand.hbm [shape: f32[256,256], index: 5, kind: input, shape index: {}]   ;;  %s783_s6 = inlined_call_operand.vmem [shape: f32[1,256], index: 6, kind: input, shape index: {}]   ;;  %s784_s7 = inlined_call_operand.hbm [shape: f32[16,256], index: 7, kind: output, shape index: {}]  }
   0x1   :  { %13 = vsyncpa [#allocation6], 0 }
   0x2   :  { %14 = vsyncpa [#allocation9], 0 }
   0x3   :  { %15 = vsyncpa [#allocation4], 0  ;;  %s689_s24 = smov [#allocation5]  }
   0x4   :  { %s33_s25 = sshll.u32 %s689_s24, 4  ;;  %s34_s25 = int_to_ptr.vmem [resolvable:$true] %s33_s25 }
   0x5   :  { %s589_s26 = scalar_lea.vmem %s34_s25, 2048  ;;  %p594_p1 = scmp.lt.s32.totalorder %s34_s25, %s34_s25 }
   0x6   :  { %p590_p0 = scmp.ne.s32.totalorder %s34_s25, %s589_s26  ;;  %p595_p2 = scmp.lt.s32.totalorder %s589_s26, %s589_s26 }
   0x8   :  { %p596_p3 = por %p595_p2, %p594_p1 }
   0xa   :  { %p597_p4 = pnand %p596_p3, %p590_p0 }
   0xc   :  { %600 = shalt.err (!%p597_p4)
}
   0xd   :  { %s690_s27 = smov 256   ;;  %s691_s28 = smov 16  }
   0xe   :  { %39 = dma.hbm_to_vmem [thread:$0]  %s778_s1, 2048, %s34_s25, [#allocation6], %s690_s27, %s690_s27, %s691_s28  }
   0xf   :  { %s692_s8 = smov [#allocation2]  }
  0x10   :  { %s21_s9 = sshll.u32 %s692_s8, 4  ;;  %s22_s9 = int_to_ptr.vmem [resolvable:$true] %s21_s9 }
  0x11   :  { %s609_s10 = scalar_lea.vmem %s22_s9, 256  ;;  %p614_p6 = scmp.lt.s32.totalorder %s22_s9, %s22_s9 }
  0x12   :  { %p610_p5 = scmp.ne.s32.totalorder %s22_s9, %s609_s10  ;;  %p615_p7 = scmp.lt.s32.totalorder %s609_s10, %s609_s10 }
  0x14   :  { %p616_p8 = por %p615_p7, %p614_p6 }
  0x16   :  { %p617_p9 = pnand %p616_p8, %p610_p5 }
  0x18   :  { %620 = shalt.err (!%p617_p9)
}
  0x19   :  { %s693_s11 = smov 128   ;;  %s694_s12 = smov 8  }
  0x1a   :  { %27 = dma.hbm_to_vmem [thread:$0]  %s777_s0, 256, %s22_s9, [#allocation3], %s693_s11, %s693_s11, %s694_s12  }
  0x1b   :  { %s695_s15 = smov [#allocation7]   ;;  %s696_s17 = smov [#allocation8]  }
  0x1c   :  { %s47_s16 = sshll.u32 %s695_s15, 4  ;;  %s61_s1 = sshll.u32 %s696_s17, 4  ;;  %s48_s16 = int_to_ptr.vmem [resolvable:$true] %s47_s16  ;;  %s62_s1 = int_to_ptr.vmem [resolvable:$true] %s61_s1 }
  0x1d   :  { %s629_s18 = scalar_lea.vmem %s48_s16, 8192  ;;  %p634_p11 = scmp.lt.s32.totalorder %s48_s16, %s48_s16 }
  0x1e   :  { %p630_p10 = scmp.ne.s32.totalorder %s48_s16, %s629_s18  ;;  %p635_p12 = scmp.lt.s32.totalorder %s629_s18, %s629_s18 }
  0x20   :  { %p636_p13 = por %p635_p12, %p634_p11 }
  0x22   :  { %p637_p0 = pnand %p636_p13, %p630_p10 }
  0x24   :  { %640 = shalt.err (!%p637_p0)
}
  0x25   :  { %53 = dma.hbm_to_vmem [thread:$0]  %s780_s3, 8192, %s48_s16, [#allocation6], %s690_s27, %s690_s27, %s691_s28  }
  0x26   :  { %s649_s0 = scalar_lea.vmem %s62_s1, 8192  ;;  %p654_p2 = scmp.lt.s32.totalorder %s62_s1, %s62_s1 }
  0x27   :  { %p650_p1 = scmp.ne.s32.totalorder %s62_s1, %s649_s0  ;;  %p655_p3 = scmp.lt.s32.totalorder %s649_s0, %s649_s0 }
  0x29   :  { %p656_p4 = por %p655_p3, %p654_p2 }
  0x2b   :  { %p657_p5 = pnand %p656_p4, %p650_p1 }
  0x2d   :  { %660 = shalt.err (!%p657_p5)
}
  0x2e   :  { %67 = dma.hbm_to_vmem [thread:$0]  %s782_s5, 8192, %s62_s1, [#allocation9], %s690_s27, %s690_s27, %s691_s28  }
  0x2f   :  { %681 = dma.done.wait [#allocation3], 256  }
  0x30   :  { %682 = vsyncadd [#allocation3], 4294967040 }
  0x31   :  { %683 = dma.done.wait [#allocation6], 10240  }
  0x32   :  { %684 = vsyncadd [#allocation6], 4294957056 }
  0x33   :  { %685 = dma.done.wait [#allocation9], 8192  }
  0x34   :  { %686 = vsyncadd [#allocation9], 4294959104  ;;  %v697_v0 = vmov 0.0   ;;  %v99_v1 = vld [vmem:[#allocation5 + $0x78] sm:$0xff]  ;;  %v98_v2 = vld [vmem:[#allocation5 + $0x70] sm:$0xff]  ;;  %vm112_vm0 = vcmask 523264  }
  0x35   :  { %183 = vmatprep.mubr.f32.mxu0 %v697_v0  ;;  %v97_v3 = vld [vmem:[#allocation5 + $0x68] sm:$0xff]  ;;  %135 = vmatprep.subr.mxu0 %v99_v1  ;;  %v96_v4 = vld [vmem:[#allocation5 + $0x60] sm:$0xff]  ;;  %v95_v5 = vld [vmem:[#allocation5 + $0x58] sm:$0xff] }
  0x36   :  { %136 = vmatpush1.msra.mxu0 %v98_v2  ;;  %v94_v6 = vld [vmem:[#allocation5 + $0x50] sm:$0xff]  ;;  %v93_v7 = vld [vmem:[#allocation5 + $0x48] sm:$0xff]  ;;  %v92_v8 = vld [vmem:[#allocation5 + $0x40] sm:$0xff] }
  0x37   :  { %137 = vmatprep.subr.mxu0 %v97_v3  ;;  %v91_v9 = vld [vmem:[#allocation5 + $0x38] sm:$0xff]  ;;  %v230_v11 = vld [vmem:[#allocation7 + $0xf0] sm:$0xff]  ;;  %v229_v12 = vld [vmem:[#allocation7 + $0xe8] sm:$0xff] }
  0x38   :  { %138 = vmatpush1.msra.mxu0 %v96_v4  ;;  %v231_v10 = vld [vmem:[#allocation7 + $0xf8] sm:$0xff]  ;;  %v90_v13 = vld [vmem:[#allocation5 + $0x30] sm:$0xff]  ;;  %v228_v14 = vld [vmem:[#allocation7 + $0xe0] sm:$0xff] }
  0x39   :  { %139 = vmatprep.subr.mxu0 %v95_v5  ;;  %276 = vmatprep.subr.mxu1 %v231_v10  ;;  %v89_v15 = vld [vmem:[#allocation5 + $0x28] sm:$0xff]  ;;  %v227_v16 = vld [vmem:[#allocation7 + $0xd8] sm:$0xff]  ;;  %v88_v17 = vld [vmem:[#allocation5 + $0x20] sm:$0xff] }
  0x3a   :  { %140 = vmatpush1.msra.mxu0 %v94_v6  ;;  %277 = vmatpush1.msra.mxu1 %v230_v11  ;;  %v226_v18 = vld [vmem:[#allocation7 + $0xd0] sm:$0xff]  ;;  %v87_v19 = vld [vmem:[#allocation5 + $0x18] sm:$0xff]  ;;  %v225_v20 = vld [vmem:[#allocation7 + $0xc8] sm:$0xff] }
  0x3b   :  { %141 = vmatprep.subr.mxu0 %v93_v7  ;;  %278 = vmatprep.subr.mxu1 %v229_v12  ;;  %v86_v21 = vld [vmem:[#allocation5 + $0x10] sm:$0xff]  ;;  %v224_v22 = vld [vmem:[#allocation7 + $0xc0] sm:$0xff]  ;;  %v85_v23 = vld [vmem:[#allocation5 + $0x8] sm:$0xff] }
  0x3c   :  { %142 = vmatpush1.msra.mxu0 %v92_v8  ;;  %279 = vmatpush1.msra.mxu1 %v228_v14  ;;  %v223_v24 = vld [vmem:[#allocation7 + $0xb8] sm:$0xff]  ;;  %v84_v25 = vld [vmem:[#allocation5] sm:$0xff]  ;;  %v222_v26 = vld [vmem:[#allocation7 + $0xb0] sm:$0xff] }
  0x3d   :  { %143 = vmatprep.subr.mxu0 %v91_v9  ;;  %280 = vmatprep.subr.mxu1 %v227_v16  ;;  %v82_v27 = vld [vmem:[#allocation2] sm:$0xff]  ;;  %v221_v28 = vld [vmem:[#allocation7 + $0xa8] sm:$0xff]  ;;  %v220_v29 = vld [vmem:[#allocation7 + $0xa0] sm:$0xff] }
  0x3e   :  { %144 = vmatpush1.msra.mxu0 %v90_v13  ;;  %281 = vmatpush1.msra.mxu1 %v226_v18  ;;  %v219_v30 = vld [vmem:[#allocation7 + $0x98] sm:$0xff]  ;;  %v218_v31 = vld [vmem:[#allocation7 + $0x90] sm:$0xff]  ;;  %v217_v33 = vld [vmem:[#allocation7 + $0x88] sm:$0xff] }
  0x3f   :  { %145 = vmatprep.subr.mxu0 %v89_v15  ;;  %282 = vmatprep.subr.mxu1 %v225_v20  ;;  %v83_v32 = vld [vmem:[#allocation2 + $0x8] sm:$0xff]  ;;  %v216_v34 = vld [vmem:[#allocation7 + $0x80] sm:$0xff]  ;;  %v214_v36 = vld [vmem:[#allocation7 + $0x70] sm:$0xff] }
  0x40   :  { %146 = vmatpush1.msra.mxu0 %v88_v17  ;;  %283 = vmatpush1.msra.mxu1 %v224_v22  ;;  %v215_v35 = vld [vmem:[#allocation7 + $0x78] sm:$0xff]  ;;  %v213_v37 = vld [vmem:[#allocation7 + $0x68] sm:$0xff]  ;;  %v212_v38 = vld [vmem:[#allocation7 + $0x60] sm:$0xff] }
  0x41   :  { %147 = vmatprep.subr.mxu0 %v87_v19  ;;  %284 = vmatprep.subr.mxu1 %v223_v24  ;;  %v211_v39 = vld [vmem:[#allocation7 + $0x58] sm:$0xff]  ;;  %v210_v40 = vld [vmem:[#allocation7 + $0x50] sm:$0xff]  ;;  %v209_v41 = vld [vmem:[#allocation7 + $0x48] sm:$0xff] }
  0x42   :  { %148 = vmatpush1.msra.mxu0 %v86_v21  ;;  %285 = vmatpush1.msra.mxu1 %v222_v26  ;;  %v208_v42 = vld [vmem:[#allocation7 + $0x40] sm:$0xff]  ;;  %v207_v43 = vld [vmem:[#allocation7 + $0x38] sm:$0xff]  ;;  %v206_v44 = vld [vmem:[#allocation7 + $0x30] sm:$0xff] }
  0x43   :  { %149 = vmatprep.subr.mxu0 %v85_v23  ;;  %286 = vmatprep.subr.mxu1 %v221_v28  ;;  %v205_v45 = vld [vmem:[#allocation7 + $0x28] sm:$0xff]  ;;  %v204_v46 = vld [vmem:[#allocation7 + $0x20] sm:$0xff]  ;;  %v203_v47 = vld [vmem:[#allocation7 + $0x18] sm:$0xff] }
  0x44   :  { %150 = vmatpush1.msra.mxu0 %v84_v25  ;;  %287 = vmatpush1.msra.mxu1 %v220_v29  ;;  %v202_v48 = vld [vmem:[#allocation7 + $0x10] sm:$0xff]  ;;  %v201_v49 = vld [vmem:[#allocation7 + $0x8] sm:$0xff]  ;;  %v200_v50 = vld [vmem:[#allocation7] sm:$0xff] }
  0x45   :  { %553 = vmatmul.mubr.msk.f32.vlgmr.msra.gmra.mxu0 %vm112_vm0, %v82_v27  ;;  %288 = vmatprep.subr.mxu1 %v219_v30  ;;  %v263_v51 = vld [vmem:[#allocation7 + $0x1f8] sm:$0xff]  ;;  %v262_v52 = vld [vmem:[#allocation7 + $0x1f0] sm:$0xff]  ;;  %v261_v53 = vld [vmem:[#allocation7 + $0x1e8] sm:$0xff] }
  0x46   :  { %189 = vmatprep.mubr.f32.mxu0 %v697_v0  ;;  %289 = vmatpush1.msra.mxu1 %v218_v31  ;;  %v260_v54 = vld [vmem:[#allocation7 + $0x1e0] sm:$0xff]  ;;  %v259_v55 = vld [vmem:[#allocation7 + $0x1d8] sm:$0xff]  ;;  %v258_v56 = vld [vmem:[#allocation7 + $0x1d0] sm:$0xff] }
  0x47   :  { %290 = vmatprep.subr.mxu1 %v217_v33  ;;  %v257_v57 = vld [vmem:[#allocation7 + $0x1c8] sm:$0xff]  ;;  %v256_v58 = vld [vmem:[#allocation7 + $0x1c0] sm:$0xff]  ;;  %v255_v59 = vld [vmem:[#allocation7 + $0x1b8] sm:$0xff] }
  0x48   :  { %291 = vmatpush1.msra.mxu1 %v216_v34  ;;  %v254_v60 = vld [vmem:[#allocation7 + $0x1b0] sm:$0xff]  ;;  %v253_v61 = vld [vmem:[#allocation7 + $0x1a8] sm:$0xff]  ;;  %v252_v62 = vld [vmem:[#allocation7 + $0x1a0] sm:$0xff] }
  0x49   :  { %554 = vmatmul.mubr.msk.f32.gmra.mxu0 %vm112_vm0, %v83_v32  ;;  %292 = vmatprep.subr.mxu1 %v215_v35  ;;  %v251_v63 = vld [vmem:[#allocation7 + $0x198] sm:$0xff]  ;;  %v250_v0 = vld [vmem:[#allocation7 + $0x190] sm:$0xff]  ;;  %v249_v1 = vld [vmem:[#allocation7 + $0x188] sm:$0xff] }
  0x4a   :  { %293 = vmatpush1.msra.mxu1 %v214_v36  ;;  %v248_v2 = vld [vmem:[#allocation7 + $0x180] sm:$0xff]  ;;  %v247_v3 = vld [vmem:[#allocation7 + $0x178] sm:$0xff]  ;;  %v246_v4 = vld [vmem:[#allocation7 + $0x170] sm:$0xff] }
  0x4b   :  { %294 = vmatprep.subr.mxu1 %v213_v37  ;;  %v245_v5 = vld [vmem:[#allocation7 + $0x168] sm:$0xff]  ;;  %v244_v6 = vld [vmem:[#allocation7 + $0x160] sm:$0xff]  ;;  %v243_v7 = vld [vmem:[#allocation7 + $0x158] sm:$0xff] }
  0x4c   :  { %295 = vmatpush1.msra.mxu1 %v212_v38  ;;  %v242_v8 = vld [vmem:[#allocation7 + $0x150] sm:$0xff]  ;;  %v241_v9 = vld [vmem:[#allocation7 + $0x148] sm:$0xff]  ;;  %v240_v10 = vld [vmem:[#allocation7 + $0x140] sm:$0xff] }
  0x4d   :  { %296 = vmatprep.subr.mxu1 %v211_v39  ;;  %v239_v11 = vld [vmem:[#allocation7 + $0x138] sm:$0xff]  ;;  %v238_v12 = vld [vmem:[#allocation7 + $0x130] sm:$0xff]  ;;  %v237_v13 = vld [vmem:[#allocation7 + $0x128] sm:$0xff] }
  0x4e   :  { %297 = vmatpush1.msra.mxu1 %v210_v40  ;;  %v236_v14 = vld [vmem:[#allocation7 + $0x120] sm:$0xff]  ;;  %v235_v15 = vld [vmem:[#allocation7 + $0x118] sm:$0xff]  ;;  %v234_v16 = vld [vmem:[#allocation7 + $0x110] sm:$0xff] }
  0x4f   :  { %298 = vmatprep.subr.mxu1 %v209_v41  ;;  %v233_v17 = vld [vmem:[#allocation7 + $0x108] sm:$0xff]  ;;  %v232_v18 = vld [vmem:[#allocation7 + $0x100] sm:$0xff]  ;;  %v388_v19 = vld [vmem:[#allocation8 + $0xf8] sm:$0xff] }
  0x50   :  { %299 = vmatpush1.msra.mxu1 %v208_v42  ;;  %v387_v20 = vld [vmem:[#allocation8 + $0xf0] sm:$0xff]  ;;  %v386_v21 = vld [vmem:[#allocation8 + $0xe8] sm:$0xff]  ;;  %433 = vmatprep.subr.mxu0 %v388_v19  ;;  %v385_v22 = vld [vmem:[#allocation8 + $0xe0] sm:$0xff] }
  0x51   :  { %300 = vmatprep.subr.mxu1 %v207_v43  ;;  %434 = vmatpush1.msra.mxu0 %v387_v20  ;;  %v384_v23 = vld [vmem:[#allocation8 + $0xd8] sm:$0xff]  ;;  %v383_v24 = vld [vmem:[#allocation8 + $0xd0] sm:$0xff]  ;;  %v382_v25 = vld [vmem:[#allocation8 + $0xc8] sm:$0xff] }
  0x52   :  { %301 = vmatpush1.msra.mxu1 %v206_v44  ;;  %435 = vmatprep.subr.mxu0 %v386_v21  ;;  %v381_v26 = vld [vmem:[#allocation8 + $0xc0] sm:$0xff]  ;;  %v380_v27 = vld [vmem:[#allocation8 + $0xb8] sm:$0xff]  ;;  %v379_v28 = vld [vmem:[#allocation8 + $0xb0] sm:$0xff] }
  0x53   :  { %302 = vmatprep.subr.mxu1 %v205_v45  ;;  %436 = vmatpush1.msra.mxu0 %v385_v22  ;;  %v378_v29 = vld [vmem:[#allocation8 + $0xa8] sm:$0xff]  ;;  %v377_v30 = vld [vmem:[#allocation8 + $0xa0] sm:$0xff]  ;;  %v376_v31 = vld [vmem:[#allocation8 + $0x98] sm:$0xff] }
  0x54   :  { %303 = vmatpush1.msra.mxu1 %v204_v46  ;;  %437 = vmatprep.subr.mxu0 %v384_v23  ;;  %v375_v32 = vld [vmem:[#allocation8 + $0x90] sm:$0xff]  ;;  %v374_v33 = vld [vmem:[#allocation8 + $0x88] sm:$0xff]  ;;  %v373_v34 = vld [vmem:[#allocation8 + $0x80] sm:$0xff] }
  0x55   :  { %304 = vmatprep.subr.mxu1 %v203_v47  ;;  %438 = vmatpush1.msra.mxu0 %v383_v24  ;;  %v372_v35 = vld [vmem:[#allocation8 + $0x78] sm:$0xff]  ;;  %v371_v36 = vld [vmem:[#allocation8 + $0x70] sm:$0xff]  ;;  %v370_v37 = vld [vmem:[#allocation8 + $0x68] sm:$0xff] }
  0x56   :  { %305 = vmatpush1.msra.mxu1 %v202_v48  ;;  %439 = vmatprep.subr.mxu0 %v382_v25  ;;  %v369_v38 = vld [vmem:[#allocation8 + $0x60] sm:$0xff]  ;;  %v368_v39 = vld [vmem:[#allocation8 + $0x58] sm:$0xff]  ;;  %v367_v40 = vld [vmem:[#allocation8 + $0x50] sm:$0xff] }
  0x57   :  { %306 = vmatprep.subr.mxu1 %v201_v49  ;;  %440 = vmatpush1.msra.mxu0 %v381_v26  ;;  %v366_v41 = vld [vmem:[#allocation8 + $0x48] sm:$0xff]  ;;  %v365_v42 = vld [vmem:[#allocation8 + $0x40] sm:$0xff]  ;;  %v364_v43 = vld [vmem:[#allocation8 + $0x38] sm:$0xff] }
  0x58   :  { %307 = vmatpush1.msra.mxu1 %v200_v50  ;;  %441 = vmatprep.subr.mxu0 %v380_v27  ;;  %v363_v44 = vld [vmem:[#allocation8 + $0x30] sm:$0xff]  ;;  %v362_v45 = vld [vmem:[#allocation8 + $0x28] sm:$0xff]  ;;  %v361_v46 = vld [vmem:[#allocation8 + $0x20] sm:$0xff] }
  0x59   :  { %308 = vmatprep.subr.mxu1 %v263_v51  ;;  %442 = vmatpush1.msra.mxu0 %v379_v28  ;;  %v360_v47 = vld [vmem:[#allocation8 + $0x18] sm:$0xff]  ;;  %v359_v48 = vld [vmem:[#allocation8 + $0x10] sm:$0xff]  ;;  %v358_v49 = vld [vmem:[#allocation8 + $0x8] sm:$0xff] }
  0x5a   :  { %309 = vmatpush2.msra.mxu1 %v262_v52  ;;  %443 = vmatprep.subr.mxu0 %v378_v29  ;;  %v357_v50 = vld [vmem:[#allocation8] sm:$0xff]  ;;  %v420_v51 = vld [vmem:[#allocation8 + $0x1f8] sm:$0xff]  ;;  %v419_v52 = vld [vmem:[#allocation8 + $0x1f0] sm:$0xff] }
  0x5b   :  { %310 = vmatprep.subr.mxu1 %v261_v53  ;;  %444 = vmatpush1.msra.mxu0 %v377_v30  ;;  %v418_v53 = vld [vmem:[#allocation8 + $0x1e8] sm:$0xff]  ;;  %v396_v30 = vld [vmem:[#allocation8 + $0x138] sm:$0xff] }
  0x5c   :  { %311 = vmatpush2.msra.mxu1 %v260_v54  ;;  %445 = vmatprep.subr.mxu0 %v376_v31  ;;  %v417_v54 = vld [vmem:[#allocation8 + $0x1e0] sm:$0xff]  ;;  %v395_v31 = vld [vmem:[#allocation8 + $0x130] sm:$0xff] }
  0x5d   :  { %312 = vmatprep.subr.mxu1 %v259_v55  ;;  %446 = vmatpush1.msra.mxu0 %v375_v32  ;;  %v416_v55 = vld [vmem:[#allocation8 + $0x1d8] sm:$0xff]  ;;  %v394_v32 = vld [vmem:[#allocation8 + $0x128] sm:$0xff] }
  0x5e   :  { %313 = vmatpush2.msra.mxu1 %v258_v56  ;;  %447 = vmatprep.subr.mxu0 %v374_v33  ;;  %v415_v56 = vld [vmem:[#allocation8 + $0x1d0] sm:$0xff]  ;;  %v393_v33 = vld [vmem:[#allocation8 + $0x120] sm:$0xff] }
  0x5f   :  { %314 = vmatprep.subr.mxu1 %v257_v57  ;;  %448 = vmatpush1.msra.mxu0 %v373_v34  ;;  %v414_v57 = vld [vmem:[#allocation8 + $0x1c8] sm:$0xff]  ;;  %v392_v34 = vld [vmem:[#allocation8 + $0x118] sm:$0xff] }
  0x60   :  { %315 = vmatpush2.msra.mxu1 %v256_v58  ;;  %449 = vmatprep.subr.mxu0 %v372_v35  ;;  %v413_v58 = vld [vmem:[#allocation8 + $0x1c0] sm:$0xff]  ;;  %v391_v35 = vld [vmem:[#allocation8 + $0x110] sm:$0xff] }
  0x61   :  { %316 = vmatprep.subr.mxu1 %v255_v59  ;;  %450 = vmatpush1.msra.mxu0 %v371_v36  ;;  %v412_v59 = vld [vmem:[#allocation8 + $0x1b8] sm:$0xff]  ;;  %v390_v36 = vld [vmem:[#allocation8 + $0x108] sm:$0xff] }
  0x62   :  { %317 = vmatpush2.msra.mxu1 %v254_v60  ;;  %451 = vmatprep.subr.mxu0 %v370_v37  ;;  %v411_v60 = vld [vmem:[#allocation8 + $0x1b0] sm:$0xff]  ;;  %v389_v37 = vld [vmem:[#allocation8 + $0x100] sm:$0xff] }
  0x63   :  { %318 = vmatprep.subr.mxu1 %v253_v61  ;;  %452 = vmatpush1.msra.mxu0 %v369_v38  ;;  %v410_v61 = vld [vmem:[#allocation8 + $0x1a8] sm:$0xff]  ;;  %v264_v38 = vld [vmem:[%s781_s4] sm:$0x3] }
  0x64   :  { %319 = vmatpush2.msra.mxu1 %v252_v62  ;;  %453 = vmatprep.subr.mxu0 %v368_v39  ;;  %v409_v62 = vld [vmem:[#allocation8 + $0x1a0] sm:$0xff] }
  0x65   :  { %320 = vmatprep.subr.mxu1 %v251_v63  ;;  %454 = vmatpush1.msra.mxu0 %v367_v40  ;;  %v408_v63 = vld [vmem:[#allocation8 + $0x198] sm:$0xff] }
  0x66   :  { %321 = vmatpush2.msra.mxu1 %v250_v0  ;;  %455 = vmatprep.subr.mxu0 %v366_v41  ;;  %v407_v0 = vld [vmem:[#allocation8 + $0x190] sm:$0xff] }
  0x67   :  { %322 = vmatprep.subr.mxu1 %v249_v1  ;;  %456 = vmatpush1.msra.mxu0 %v365_v42  ;;  %v406_v1 = vld [vmem:[#allocation8 + $0x188] sm:$0xff] }
  0x68   :  { %323 = vmatpush2.msra.mxu1 %v248_v2  ;;  %457 = vmatprep.subr.mxu0 %v364_v43  ;;  %v405_v2 = vld [vmem:[#allocation8 + $0x180] sm:$0xff] }
  0x69   :  { %324 = vmatprep.subr.mxu1 %v247_v3  ;;  %458 = vmatpush1.msra.mxu0 %v363_v44  ;;  %v404_v3 = vld [vmem:[#allocation8 + $0x178] sm:$0xff] }
  0x6a   :  { %325 = vmatpush2.msra.mxu1 %v246_v4  ;;  %459 = vmatprep.subr.mxu0 %v362_v45  ;;  %v403_v4 = vld [vmem:[#allocation8 + $0x170] sm:$0xff] }
  0x6b   :  { %326 = vmatprep.subr.mxu1 %v245_v5  ;;  %460 = vmatpush1.msra.mxu0 %v361_v46  ;;  %v402_v5 = vld [vmem:[#allocation8 + $0x168] sm:$0xff] }
  0x6c   :  { %327 = vmatpush2.msra.mxu1 %v244_v6  ;;  %461 = vmatprep.subr.mxu0 %v360_v47  ;;  %v401_v6 = vld [vmem:[#allocation8 + $0x160] sm:$0xff] }
  0x6d   :  { %328 = vmatprep.subr.mxu1 %v243_v7  ;;  %462 = vmatpush1.msra.mxu0 %v359_v48  ;;  %v400_v7 = vld [vmem:[#allocation8 + $0x158] sm:$0xff] }
  0x6e   :  { %329 = vmatpush2.msra.mxu1 %v242_v8  ;;  %463 = vmatprep.subr.mxu0 %v358_v49  ;;  %v399_v8 = vld [vmem:[#allocation8 + $0x150] sm:$0xff] }
  0x6f   :  { %330 = vmatprep.subr.mxu1 %v241_v9  ;;  %464 = vmatpush1.msra.mxu0 %v357_v50  ;;  %v398_v9 = vld [vmem:[#allocation8 + $0x148] sm:$0xff] }
  0x70   :  { %331 = vmatpush2.msra.mxu1 %v240_v10  ;;  %465 = vmatprep.subr.mxu0 %v420_v51  ;;  %v397_v10 = vld [vmem:[#allocation8 + $0x140] sm:$0xff] }
  0x71   :  { %332 = vmatprep.subr.mxu1 %v239_v11  ;;  %466 = vmatpush2.msra.mxu0 %v419_v52  ;;  %v102_v11 = vlaneseq }
  0x72   :  { %333 = vmatpush2.msra.mxu1 %v238_v12  ;;  %467 = vmatprep.subr.mxu0 %v418_v53  ;;  %v421_v53 = vld [vmem:[%s783_s6] sm:$0x3]  ;;  %s698_s6 = smov [#allocation10]  }
  0x73   :  { %334 = vmatprep.subr.mxu1 %v237_v13  ;;  %468 = vmatpush2.msra.mxu0 %v417_v54  ;;  %v103_v12 = vshrl.u32 %v102_v11, 7  ;;  %s539_s25 = sshll.u32 %s698_s6, 4  ;;  %s540_s25 = int_to_ptr.vmem [resolvable:$true] %s539_s25 }
  0x74   :  { %335 = vmatpush2.msra.mxu1 %v236_v14  ;;  %469 = vmatprep.subr.mxu0 %v416_v55  ;;  %v100_v14 = vld [vmem:[%s779_s2] sm:$0x3]  ;;  %s661_s26 = scalar_lea.vmem %s540_s25, 512  ;;  %p666_p7 = scmp.lt.s32.totalorder %s540_s25, %s540_s25 }
  0x75   :  { %336 = vmatprep.subr.mxu1 %v235_v15  ;;  %470 = vmatpush2.msra.mxu0 %v415_v56  ;;  %v104_v13 = vsub.s32 0, %v103_v12  ;;  %v108_v15 = vsub.s32 1, %v103_v12  ;;  %p662_p6 = scmp.ne.s32.totalorder %s540_s25, %s661_s26  ;;  %p667_p8 = scmp.lt.s32.totalorder %s661_s26, %s661_s26 }
  0x76   :  { %337 = vmatpush2.msra.mxu1 %v234_v16  ;;  %471 = vmatprep.subr.mxu0 %v414_v57 }
  0x77   :  { %338 = vmatprep.subr.mxu1 %v233_v17  ;;  %472 = vmatpush2.msra.mxu0 %v413_v58  ;;  %v105_v16 = vrot.slane %v100_v14, %v104_v13  ;;  %v109_v17 = vrot.slane %v100_v14, %v108_v15  ;;  %v269_v39 = vrot.slane %v264_v38, %v104_v13  ;;  %p668_p9 = por %p667_p8, %p666_p7 }
  0x78   :  { %339 = vmatpush2.msra.mxu1 %v232_v18  ;;  %473 = vmatprep.subr.mxu0 %v412_v59  ;;  %v273_v40 = vrot.slane %v264_v38, %v108_v15  ;;  %v426_v54 = vrot.slane %v421_v53, %v104_v13  ;;  %v430_v55 = vrot.slane %v421_v53, %v108_v15 }
  0x79   :  { %474 = vmatpush2.msra.mxu0 %v411_v60  ;;  %p669_p10 = pnand %p668_p9, %p662_p6 }
  0x7a   :  { %475 = vmatprep.subr.mxu0 %v410_v61 }
  0x7b   :  { %476 = vmatpush2.msra.mxu0 %v409_v62 }
  0x7c   :  { %477 = vmatprep.subr.mxu0 %v408_v63 }
  0x7d   :  { %478 = vmatpush2.msra.mxu0 %v407_v0 }
  0x7e   :  { %479 = vmatprep.subr.mxu0 %v406_v1 }
  0x7f   :  { %480 = vmatpush2.msra.mxu0 %v405_v2 }
  0x80   :  { %481 = vmatprep.subr.mxu0 %v404_v3 }
  0x81   :  { %482 = vmatpush2.msra.mxu0 %v403_v4 }
  0x82   :  { %483 = vmatprep.subr.mxu0 %v402_v5 }
  0x83   :  { %484 = vmatpush2.msra.mxu0 %v401_v6 }
  0x84   :  { %485 = vmatprep.subr.mxu0 %v400_v7 }
  0x85   :  { %486 = vmatpush2.msra.mxu0 %v399_v8 }
  0x86   :  { %487 = vmatprep.subr.mxu0 %v398_v9 }
  0x87   :  { %488 = vmatpush2.msra.mxu0 %v397_v10 }
  0x88   :  { %489 = vmatprep.subr.mxu0 %v396_v30 }
  0x89   :  { %490 = vmatpush2.msra.mxu0 %v395_v31 }
  0x8a   :  { %491 = vmatprep.subr.mxu0 %v394_v32 }
  0x8b   :  { %492 = vmatpush2.msra.mxu0 %v393_v33 }
  0x8c   :  { %493 = vmatprep.subr.mxu0 %v392_v34 }
  0x8d   :  { %494 = vmatpush2.msra.mxu0 %v391_v35 }
  0x8e   :  { %495 = vmatprep.subr.mxu0 %v390_v36 }
  0x8f   :  { %496 = vmatpush2.msra.mxu0 %v389_v37 }
 0x105   :  { %v185_v18 = vpop.f32.mrf.mxu0 }
 0x106   :  { %v186_v19 = vadd.f32 %v185_v18, %v105_v16 }
 0x107   :  { %v187_v20 = vpop.f32.mrf.mxu0 }
 0x108   :  { %v188_v21 = vadd.f32 %v187_v20, %v109_v17  ;;  %v196_v24 = vmax.f32 %v186_v19, 0.0 }
 0x109   :  { %v191_v22 = vpop.f32.mrf.mxu0 }
 0x10a   :  { %v197_v23 = vmax.f32 %v188_v21, 0.0  ;;  %v192_v25 = vadd.f32 %v191_v22, %v105_v16 }
 0x10b   :  { %v193_v26 = vpop.f32.mrf.mxu0 }
 0x10c   :  { %v194_v27 = vadd.f32 %v193_v26, %v109_v17  ;;  %340 = vmatprep.mubr.f32.mxu1 %v197_v23  ;;  %v198_v29 = vmax.f32 %v192_v25, 0.0 }
 0x10d   :  { %341 = vmatmul.mubr.f32.vlgmr.msra.gmra.mxu1 %v196_v24 }
 0x10e   :  { %v199_v28 = vmax.f32 %v194_v27, 0.0 }
 0x110   :  { %346 = vmatprep.mubr.f32.mxu1 %v199_v28 }
 0x111   :  { %347 = vmatmul.mubr.f32.gmra.mxu1 %v198_v29 }
 0x1cd   :  { %v342_v41 = vpop.f32.mrf.mxu1 }
 0x1ce   :  { %v343_v42 = vadd.f32 %v342_v41, %v269_v39 }
 0x1cf   :  { %v344_v43 = vpop.f32.mrf.mxu1 }
 0x1d0   :  { %v345_v44 = vadd.f32 %v344_v43, %v273_v40  ;;  %v353_v47 = vmax.f32 %v343_v42, 0.0 }
 0x1d1   :  { %v348_v45 = vpop.f32.mrf.mxu1 }
 0x1d2   :  { %v354_v46 = vmax.f32 %v345_v44, 0.0  ;;  %v349_v48 = vadd.f32 %v348_v45, %v269_v39 }
 0x1d3   :  { %v350_v49 = vpop.f32.mrf.mxu1 }
 0x1d4   :  { %v351_v50 = vadd.f32 %v350_v49, %v273_v40  ;;  %497 = vmatprep.mubr.f32.mxu0 %v354_v46  ;;  %v355_v52 = vmax.f32 %v349_v48, 0.0 }
 0x1d5   :  { %498 = vmatmul.mubr.f32.vlgmr.msra.gmra.mxu0 %v353_v47 }
 0x1d6   :  { %v356_v51 = vmax.f32 %v351_v50, 0.0 }
 0x1d8   :  { %503 = vmatprep.mubr.f32.mxu0 %v356_v51 }
 0x1d9   :  { %504 = vmatmul.mubr.f32.gmra.mxu0 %v355_v52 }
 0x295   :  { %v499_v56 = vpop.f32.mrf.mxu0 }
 0x296   :  { %v500_v57 = vadd.f32 %v499_v56, %v426_v54 }
 0x297   :  { %v501_v58 = vpop.f32.mrf.mxu0 }
 0x298   :  { %v510_v59 = vsub.f32 0.0, %v500_v57  ;;  %v502_v60 = vadd.f32 %v501_v58, %v430_v55 }
 0x299   :  { %v505_v61 = vpop.f32.mrf.mxu0 }
 0x29a   :  { %v514_v62 = vmul.f32 1.442695, %v510_v59  ;;  %v511_v63 = vsub.f32 0.0, %v502_v60  ;;  %v506_v0 = vadd.f32 %v505_v61, %v426_v54 }
 0x29b   :  { %v507_v1 = vpop.f32.mrf.mxu0 }
 0x29c   :  { %565 = vpow2.f32 %v514_v62  ;;  %v516_v2 = vmul.f32 1.442695, %v511_v63  ;;  %v512_v3 = vsub.f32 0.0, %v506_v0  ;;  %v508_v4 = vadd.f32 %v507_v1, %v430_v55 }
 0x29e   :  { %567 = vpow2.f32 %v516_v2  ;;  %v518_v5 = vmul.f32 1.442695, %v512_v3  ;;  %v513_v6 = vsub.f32 0.0, %v508_v4 }
 0x2a0   :  { %569 = vpow2.f32 %v518_v5  ;;  %v520_v7 = vmul.f32 1.442695, %v513_v6 }
 0x2a2   :  { %571 = vpow2.f32 %v520_v7 }
 0x2a9   :  { %v566_v8 = vpop.eup %565 }
 0x2aa   :  { %v522_v9 = vadd.f32 1.0, %v566_v8 }
 0x2ab   :  { %v568_v10 = vpop.eup %567 }
 0x2ac   :  { %573 = vrcp.f32 %v522_v9  ;;  %v523_v11 = vadd.f32 1.0, %v568_v10 }
 0x2ad   :  { %v570_v12 = vpop.eup %569 }
 0x2ae   :  { %575 = vrcp.f32 %v523_v11  ;;  %v524_v13 = vadd.f32 1.0, %v570_v12 }
 0x2af   :  { %v572_v14 = vpop.eup %571 }
 0x2b0   :  { %577 = vrcp.f32 %v524_v13  ;;  %v525_v15 = vadd.f32 1.0, %v572_v14 }
 0x2b2   :  { %579 = vrcp.f32 %v525_v15 }
 0x2b9   :  { %v574_v16 = vpop.eup %573 }
 0x2ba   :  { %530 = vst [vmem:[#allocation10] sm:$0xff] %v574_v16 }
 0x2bb   :  { %v576_v17 = vpop.eup %575 }
 0x2bc   :  { %531 = vst [vmem:[#allocation10 + $0x8] sm:$0xff] %v576_v17 }
 0x2bd   :  { %v578_v18 = vpop.eup %577 }
 0x2be   :  { %532 = vst [vmem:[#allocation10 + $0x10] sm:$0xff] %v578_v18 }
 0x2bf   :  { %v580_v19 = vpop.eup %579 }
 0x2c0   :  { %533 = vst [vmem:[#allocation10 + $0x18] sm:$0xff] %v580_v19 }
 0x2c1   :  { %672 = shalt.err (!%p669_p10)
}
 0x2c2   :  { %545 = dma.vmem_to_hbm [thread:$0]  %s540_s25, 512, %s784_s7, [#allocation4], %s690_s27, %s690_s27, %s691_s28  }
 0x2c3   :  { %687 = dma.done.wait [#allocation4], 512  }
 0x2c4   :  { %688 = vsyncadd [#allocation4], 4294966784 }
 0x2c5   :  { %549 = vsyncpa [#allocation3], 1 }
 0x2c6   :  { %550 = vsyncpa [#allocation6], 1 }
 0x2c7   :  { %551 = vsyncpa [#allocation9], 1 }
 0x2c8   :  { %552 = vsyncpa [#allocation4], 1 }

// kernel: tpu_custom_call.1
= control target key start
LH: loop header
LB: loop body
LE: loop exit
PB: predicated region body
PF: predicated region fallthrough
CT: control target
= control target key end

     0   :  { %12 = vsyncpa [#allocation3], 0  ;;  %s777_s0 = inlined_call_operand.hbm [shape: f32[16,64], index: 0, kind: input, shape index: {}]   ;;  %s778_s1 = inlined_call_operand.hbm [shape: f32[64,256], index: 1, kind: input, shape index: {}]   ;;  %s779_s2 = inlined_call_operand.vmem [shape: f32[1,256], index: 2, kind: input, shape index: {}]   ;;  %s780_s3 = inlined_call_operand.hbm [shape: f32[256,256], index: 3, kind: input, shape index: {}]   ;;  %s781_s4 = inlined_call_operand.vmem [shape: f32[1,256], index: 4, kind: input, shape index: {}]   ;;  %s782_s5 = inlined_call_operand.hbm [shape: f32[256,256], index: 5, kind: input, shape index: {}]   ;;  %s783_s6 = inlined_call_operand.vmem [shape: f32[1,256], index: 6, kind: input, shape index: {}]   ;;  %s784_s7 = inlined_call_operand.hbm [shape: f32[16,256], index: 7, kind: output, shape index: {}]  }
   0x1   :  { %13 = vsyncpa [#allocation6], 0 }
   0x2   :  { %14 = vsyncpa [#allocation9], 0 }
   0x3   :  { %15 = vsyncpa [#allocation4], 0  ;;  %s689_s24 = smov [#allocation5]  }
   0x4   :  { %s33_s25 = sshll.u32 %s689_s24, 4  ;;  %s34_s25 = int_to_ptr.vmem [resolvable:$true] %s33_s25 }
   0x5   :  { %s589_s26 = scalar_lea.vmem %s34_s25, 2048  ;;  %p594_p1 = scmp.lt.s32.totalorder %s34_s25, %s34_s25 }
   0x6   :  { %p590_p0 = scmp.ne.s32.totalorder %s34_s25, %s589_s26  ;;  %p595_p2 = scmp.lt.s32.totalorder %s589_s26, %s589_s26 }
   0x8   :  { %p596_p3 = por %p595_p2, %p594_p1 }
   0xa   :  { %p597_p4 = pnand %p596_p3, %p590_p0 }
   0xc   :  { %600 = shalt.err (!%p597_p4)
}
   0xd   :  { %s690_s27 = smov 256   ;;  %s691_s28 = smov 16  }
   0xe   :  { %39 = dma.hbm_to_vmem [thread:$0]  %s778_s1, 2048, %s34_s25, [#allocation6], %s690_s27, %s690_s27, %s691_s28  }
   0xf   :  { %s692_s8 = smov [#allocation2]  }
  0x10   :  { %s21_s9 = sshll.u32 %s692_s8, 4  ;;  %s22_s9 = int_to_ptr.vmem [resolvable:$true] %s21_s9 }
  0x11   :  { %s609_s10 = scalar_lea.vmem %s22_s9, 256  ;;  %p614_p6 = scmp.lt.s32.totalorder %s22_s9, %s22_s9 }
  0x12   :  { %p610_p5 = scmp.ne.s32.totalorder %s22_s9, %s609_s10  ;;  %p615_p7 = scmp.lt.s32.totalorder %s609_s10, %s609_s10 }
  0x14   :  { %p616_p8 = por %p615_p7, %p614_p6 }
  0x16   :  { %p617_p9 = pnand %p616_p8, %p610_p5 }
  0x18   :  { %620 = shalt.err (!%p617_p9)
}
  0x19   :  { %s693_s11 = smov 128   ;;  %s694_s12 = smov 8  }
  0x1a   :  { %27 = dma.hbm_to_vmem [thread:$0]  %s777_s0, 256, %s22_s9, [#allocation3], %s693_s11, %s693_s11, %s694_s12  }
  0x1b   :  { %s695_s15 = smov [#allocation7]   ;;  %s696_s17 = smov [#allocation8]  }
  0x1c   :  { %s47_s16 = sshll.u32 %s695_s15, 4  ;;  %s61_s1 = sshll.u32 %s696_s17, 4  ;;  %s48_s16 = int_to_ptr.vmem [resolvable:$true] %s47_s16  ;;  %s62_s1 = int_to_ptr.vmem [resolvable:$true] %s61_s1 }
  0x1d   :  { %s629_s18 = scalar_lea.vmem %s48_s16, 8192  ;;  %p634_p11 = scmp.lt.s32.totalorder %s48_s16, %s48_s16 }
  0x1e   :  { %p630_p10 = scmp.ne.s32.totalorder %s48_s16, %s629_s18  ;;  %p635_p12 = scmp.lt.s32.totalorder %s629_s18, %s629_s18 }
  0x20   :  { %p636_p13 = por %p635_p12, %p634_p11 }
  0x22   :  { %p637_p0 = pnand %p636_p13, %p630_p10 }
  0x24   :  { %640 = shalt.err (!%p637_p0)
}
  0x25   :  { %53 = dma.hbm_to_vmem [thread:$0]  %s780_s3, 8192, %s48_s16, [#allocation6], %s690_s27, %s690_s27, %s691_s28  }
  0x26   :  { %s649_s0 = scalar_lea.vmem %s62_s1, 8192  ;;  %p654_p2 = scmp.lt.s32.totalorder %s62_s1, %s62_s1 }
  0x27   :  { %p650_p1 = scmp.ne.s32.totalorder %s62_s1, %s649_s0  ;;  %p655_p3 = scmp.lt.s32.totalorder %s649_s0, %s649_s0 }
  0x29   :  { %p656_p4 = por %p655_p3, %p654_p2 }
  0x2b   :  { %p657_p5 = pnand %p656_p4, %p650_p1 }
  0x2d   :  { %660 = shalt.err (!%p657_p5)
}
  0x2e   :  { %67 = dma.hbm_to_vmem [thread:$0]  %s782_s5, 8192, %s62_s1, [#allocation9], %s690_s27, %s690_s27, %s691_s28  }
  0x2f   :  { %681 = dma.done.wait [#allocation3], 256  }
  0x30   :  { %682 = vsyncadd [#allocation3], 4294967040 }
  0x31   :  { %683 = dma.done.wait [#allocation6], 10240  }
  0x32   :  { %684 = vsyncadd [#allocation6], 4294957056 }
  0x33   :  { %685 = dma.done.wait [#allocation9], 8192  }
  0x34   :  { %686 = vsyncadd [#allocation9], 4294959104  ;;  %v697_v0 = vmov 0.0   ;;  %v99_v1 = vld [vmem:[#allocation5 + $0x78] sm:$0xff]  ;;  %v98_v2 = vld [vmem:[#allocation5 + $0x70] sm:$0xff]  ;;  %vm112_vm0 = vcmask 523264  }
  0x35   :  { %183 = vmatprep.mubr.f32.mxu0 %v697_v0  ;;  %v97_v3 = vld [vmem:[#allocation5 + $0x68] sm:$0xff]  ;;  %135 = vmatprep.subr.mxu0 %v99_v1  ;;  %v96_v4 = vld [vmem:[#allocation5 + $0x60] sm:$0xff]  ;;  %v95_v5 = vld [vmem:[#allocation5 + $0x58] sm:$0xff] }
  0x36   :  { %136 = vmatpush1.msra.mxu0 %v98_v2  ;;  %v94_v6 = vld [vmem:[#allocation5 + $0x50] sm:$0xff]  ;;  %v93_v7 = vld [vmem:[#allocation5 + $0x48] sm:$0xff]  ;;  %v92_v8 = vld [vmem:[#allocation5 + $0x40] sm:$0xff] }
  0x37   :  { %137 = vmatprep.subr.mxu0 %v97_v3  ;;  %v91_v9 = vld [vmem:[#allocation5 + $0x38] sm:$0xff]  ;;  %v230_v11 = vld [vmem:[#allocation7 + $0xf0] sm:$0xff]  ;;  %v229_v12 = vld [vmem:[#allocation7 + $0xe8] sm:$0xff] }
  0x38   :  { %138 = vmatpush1.msra.mxu0 %v96_v4  ;;  %v231_v10 = vld [vmem:[#allocation7 + $0xf8] sm:$0xff]  ;;  %v90_v13 = vld [vmem:[#allocation5 + $0x30] sm:$0xff]  ;;  %v228_v14 = vld [vmem:[#allocation7 + $0xe0] sm:$0xff] }
  0x39   :  { %139 = vmatprep.subr.mxu0 %v95_v5  ;;  %276 = vmatprep.subr.mxu1 %v231_v10  ;;  %v89_v15 = vld [vmem:[#allocation5 + $0x28] sm:$0xff]  ;;  %v227_v16 = vld [vmem:[#allocation7 + $0xd8] sm:$0xff]  ;;  %v88_v17 = vld [vmem:[#allocation5 + $0x20] sm:$0xff] }
  0x3a   :  { %140 = vmatpush1.msra.mxu0 %v94_v6  ;;  %277 = vmatpush1.msra.mxu1 %v230_v11  ;;  %v226_v18 = vld [vmem:[#allocation7 + $0xd0] sm:$0xff]  ;;  %v87_v19 = vld [vmem:[#allocation5 + $0x18] sm:$0xff]  ;;  %v225_v20 = vld [vmem:[#allocation7 + $0xc8] sm:$0xff] }
  0x3b   :  { %141 = vmatprep.subr.mxu0 %v93_v7  ;;  %278 = vmatprep.subr.mxu1 %v229_v12  ;;  %v86_v21 = vld [vmem:[#allocation5 + $0x10] sm:$0xff]  ;;  %v224_v22 = vld [vmem:[#allocation7 + $0xc0] sm:$0xff]  ;;  %v85_v23 = vld [vmem:[#allocation5 + $0x8] sm:$0xff] }
  0x3c   :  { %142 = vmatpush1.msra.mxu0 %v92_v8  ;;  %279 = vmatpush1.msra.mxu1 %v228_v14  ;;  %v223_v24 = vld [vmem:[#allocation7 + $0xb8] sm:$0xff]  ;;  %v84_v25 = vld [vmem:[#allocation5] sm:$0xff]  ;;  %v222_v26 = vld [vmem:[#allocation7 + $0xb0] sm:$0xff] }
  0x3d   :  { %143 = vmatprep.subr.mxu0 %v91_v9  ;;  %280 = vmatprep.subr.mxu1 %v227_v16  ;;  %v82_v27 = vld [vmem:[#allocation2] sm:$0xff]  ;;  %v221_v28 = vld [vmem:[#allocation7 + $0xa8] sm:$0xff]  ;;  %v220_v29 = vld [vmem:[#allocation7 + $0xa0] sm:$0xff] }
  0x3e   :  { %144 = vmatpush1.msra.mxu0 %v90_v13  ;;  %281 = vmatpush1.msra.mxu1 %v226_v18  ;;  %v219_v30 = vld [vmem:[#allocation7 + $0x98] sm:$0xff]  ;;  %v218_v31 = vld [vmem:[#allocation7 + $0x90] sm:$0xff]  ;;  %v217_v33 = vld [vmem:[#allocation7 + $0x88] sm:$0xff] }
  0x3f   :  { %145 = vmatprep.subr.mxu0 %v89_v15  ;;  %282 = vmatprep.subr.mxu1 %v225_v20  ;;  %v83_v32 = vld [vmem:[#allocation2 + $0x8] sm:$0xff]  ;;  %v216_v34 = vld [vmem:[#allocation7 + $0x80] sm:$0xff]  ;;  %v214_v36 = vld [vmem:[#allocation7 + $0x70] sm:$0xff] }
  0x40   :  { %146 = vmatpush1.msra.mxu0 %v88_v17  ;;  %283 = vmatpush1.msra.mxu1 %v224_v22  ;;  %v215_v35 = vld [vmem:[#allocation7 + $0x78] sm:$0xff]  ;;  %v213_v37 = vld [vmem:[#allocation7 + $0x68] sm:$0xff]  ;;  %v212_v38 = vld [vmem:[#allocation7 + $0x60] sm:$0xff] }
  0x41   :  { %147 = vmatprep.subr.mxu0 %v87_v19  ;;  %284 = vmatprep.subr.mxu1 %v223_v24  ;;  %v211_v39 = vld [vmem:[#allocation7 + $0x58] sm:$0xff]  ;;  %v210_v40 = vld [vmem:[#allocation7 + $0x50] sm:$0xff]  ;;  %v209_v41 = vld [vmem:[#allocation7 + $0x48] sm:$0xff] }
  0x42   :  { %148 = vmatpush1.msra.mxu0 %v86_v21  ;;  %285 = vmatpush1.msra.mxu1 %v222_v26  ;;  %v208_v42 = vld [vmem:[#allocation7 + $0x40] sm:$0xff]  ;;  %v207_v43 = vld [vmem:[#allocation7 + $0x38] sm:$0xff]  ;;  %v206_v44 = vld [vmem:[#allocation7 + $0x30] sm:$0xff] }
  0x43   :  { %149 = vmatprep.subr.mxu0 %v85_v23  ;;  %286 = vmatprep.subr.mxu1 %v221_v28  ;;  %v205_v45 = vld [vmem:[#allocation7 + $0x28] sm:$0xff]  ;;  %v204_v46 = vld [vmem:[#allocation7 + $0x20] sm:$0xff]  ;;  %v203_v47 = vld [vmem:[#allocation7 + $0x18] sm:$0xff] }
  0x44   :  { %150 = vmatpush1.msra.mxu0 %v84_v25  ;;  %287 = vmatpush1.msra.mxu1 %v220_v29  ;;  %v202_v48 = vld [vmem:[#allocation7 + $0x10] sm:$0xff]  ;;  %v201_v49 = vld [vmem:[#allocation7 + $0x8] sm:$0xff]  ;;  %v200_v50 = vld [vmem:[#allocation7] sm:$0xff] }
  0x45   :  { %553 = vmatmul.mubr.msk.f32.vlgmr.msra.gmra.mxu0 %vm112_vm0, %v82_v27  ;;  %288 = vmatprep.subr.mxu1 %v219_v30  ;;  %v263_v51 = vld [vmem:[#allocation7 + $0x1f8] sm:$0xff]  ;;  %v262_v52 = vld [vmem:[#allocation7 + $0x1f0] sm:$0xff]  ;;  %v261_v53 = vld [vmem:[#allocation7 + $0x1e8] sm:$0xff] }
  0x46   :  { %189 = vmatprep.mubr.f32.mxu0 %v697_v0  ;;  %289 = vmatpush1.msra.mxu1 %v218_v31  ;;  %v260_v54 = vld [vmem:[#allocation7 + $0x1e0] sm:$0xff]  ;;  %v259_v55 = vld [vmem:[#allocation7 + $0x1d8] sm:$0xff]  ;;  %v258_v56 = vld [vmem:[#allocation7 + $0x1d0] sm:$0xff] }
  0x47   :  { %290 = vmatprep.subr.mxu1 %v217_v33  ;;  %v257_v57 = vld [vmem:[#allocation7 + $0x1c8] sm:$0xff]  ;;  %v256_v58 = vld [vmem:[#allocation7 + $0x1c0] sm:$0xff]  ;;  %v255_v59 = vld [vmem:[#allocation7 + $0x1b8] sm:$0xff] }
  0x48   :  { %291 = vmatpush1.msra.mxu1 %v216_v34  ;;  %v254_v60 = vld [vmem:[#allocation7 + $0x1b0] sm:$0xff]  ;;  %v253_v61 = vld [vmem:[#allocation7 + $0x1a8] sm:$0xff]  ;;  %v252_v62 = vld [vmem:[#allocation7 + $0x1a0] sm:$0xff] }
  0x49   :  { %554 = vmatmul.mubr.msk.f32.gmra.mxu0 %vm112_vm0, %v83_v32  ;;  %292 = vmatprep.subr.mxu1 %v215_v35  ;;  %v251_v63 = vld [vmem:[#allocation7 + $0x198] sm:$0xff]  ;;  %v250_v0 = vld [vmem:[#allocation7 + $0x190] sm:$0xff]  ;;  %v249_v1 = vld [vmem:[#allocation7 + $0x188] sm:$0xff] }
  0x4a   :  { %293 = vmatpush1.msra.mxu1 %v214_v36  ;;  %v248_v2 = vld [vmem:[#allocation7 + $0x180] sm:$0xff]  ;;  %v247_v3 = vld [vmem:[#allocation7 + $0x178] sm:$0xff]  ;;  %v246_v4 = vld [vmem:[#allocation7 + $0x170] sm:$0xff] }
  0x4b   :  { %294 = vmatprep.subr.mxu1 %v213_v37  ;;  %v245_v5 = vld [vmem:[#allocation7 + $0x168] sm:$0xff]  ;;  %v244_v6 = vld [vmem:[#allocation7 + $0x160] sm:$0xff]  ;;  %v243_v7 = vld [vmem:[#allocation7 + $0x158] sm:$0xff] }
  0x4c   :  { %295 = vmatpush1.msra.mxu1 %v212_v38  ;;  %v242_v8 = vld [vmem:[#allocation7 + $0x150] sm:$0xff]  ;;  %v241_v9 = vld [vmem:[#allocation7 + $0x148] sm:$0xff]  ;;  %v240_v10 = vld [vmem:[#allocation7 + $0x140] sm:$0xff] }
  0x4d   :  { %296 = vmatprep.subr.mxu1 %v211_v39  ;;  %v239_v11 = vld [vmem:[#allocation7 + $0x138] sm:$0xff]  ;;  %v238_v12 = vld [vmem:[#allocation7 + $0x130] sm:$0xff]  ;;  %v237_v13 = vld [vmem:[#allocation7 + $0x128] sm:$0xff] }
  0x4e   :  { %297 = vmatpush1.msra.mxu1 %v210_v40  ;;  %v236_v14 = vld [vmem:[#allocation7 + $0x120] sm:$0xff]  ;;  %v235_v15 = vld [vmem:[#allocation7 + $0x118] sm:$0xff]  ;;  %v234_v16 = vld [vmem:[#allocation7 + $0x110] sm:$0xff] }
  0x4f   :  { %298 = vmatprep.subr.mxu1 %v209_v41  ;;  %v233_v17 = vld [vmem:[#allocation7 + $0x108] sm:$0xff]  ;;  %v232_v18 = vld [vmem:[#allocation7 + $0x100] sm:$0xff]  ;;  %v388_v19 = vld [vmem:[#allocation8 + $0xf8] sm:$0xff] }
  0x50   :  { %299 = vmatpush1.msra.mxu1 %v208_v42  ;;  %v387_v20 = vld [vmem:[#allocation8 + $0xf0] sm:$0xff]  ;;  %v386_v21 = vld [vmem:[#allocation8 + $0xe8] sm:$0xff]  ;;  %433 = vmatprep.subr.mxu0 %v388_v19  ;;  %v385_v22 = vld [vmem:[#allocation8 + $0xe0] sm:$0xff] }
  0x51   :  { %300 = vmatprep.subr.mxu1 %v207_v43  ;;  %434 = vmatpush1.msra.mxu0 %v387_v20  ;;  %v384_v23 = vld [vmem:[#allocation8 + $0xd8] sm:$0xff]  ;;  %v383_v24 = vld [vmem:[#allocation8 + $0xd0] sm:$0xff]  ;;  %v382_v25 = vld [vmem:[#allocation8 + $0xc8] sm:$0xff] }
  0x52   :  { %301 = vmatpush1.msra.mxu1 %v206_v44  ;;  %435 = vmatprep.subr.mxu0 %v386_v21  ;;  %v381_v26 = vld [vmem:[#allocation8 + $0xc0] sm:$0xff]  ;;  %v380_v27 = vld [vmem:[#allocation8 + $0xb8] sm:$0xff]  ;;  %v379_v28 = vld [vmem:[#allocation8 + $0xb0] sm:$0xff] }
  0x53   :  { %302 = vmatprep.subr.mxu1 %v205_v45  ;;  %436 = vmatpush1.msra.mxu0 %v385_v22  ;;  %v378_v29 = vld [vmem:[#allocation8 + $0xa8] sm:$0xff]  ;;  %v377_v30 = vld [vmem:[#allocation8 + $0xa0] sm:$0xff]  ;;  %v376_v31 = vld [vmem:[#allocation8 + $0x98] sm:$0xff] }
  0x54   :  { %303 = vmatpush1.msra.mxu1 %v204_v46  ;;  %437 = vmatprep.subr.mxu0 %v384_v23  ;;  %v375_v32 = vld [vmem:[#allocation8 + $0x90] sm:$0xff]  ;;  %v374_v33 = vld [vmem:[#allocation8 + $0x88] sm:$0xff]  ;;  %v373_v34 = vld [vmem:[#allocation8 + $0x80] sm:$0xff] }
  0x55   :  { %304 = vmatprep.subr.mxu1 %v203_v47  ;;  %438 = vmatpush1.msra.mxu0 %v383_v24  ;;  %v372_v35 = vld [vmem:[#allocation8 + $0x78] sm:$0xff]  ;;  %v371_v36 = vld [vmem:[#allocation8 + $0x70] sm:$0xff]  ;;  %v370_v37 = vld [vmem:[#allocation8 + $0x68] sm:$0xff] }
  0x56   :  { %305 = vmatpush1.msra.mxu1 %v202_v48  ;;  %439 = vmatprep.subr.mxu0 %v382_v25  ;;  %v369_v38 = vld [vmem:[#allocation8 + $0x60] sm:$0xff]  ;;  %v368_v39 = vld [vmem:[#allocation8 + $0x58] sm:$0xff]  ;;  %v367_v40 = vld [vmem:[#allocation8 + $0x50] sm:$0xff] }
  0x57   :  { %306 = vmatprep.subr.mxu1 %v201_v49  ;;  %440 = vmatpush1.msra.mxu0 %v381_v26  ;;  %v366_v41 = vld [vmem:[#allocation8 + $0x48] sm:$0xff]  ;;  %v365_v42 = vld [vmem:[#allocation8 + $0x40] sm:$0xff]  ;;  %v364_v43 = vld [vmem:[#allocation8 + $0x38] sm:$0xff] }
  0x58   :  { %307 = vmatpush1.msra.mxu1 %v200_v50  ;;  %441 = vmatprep.subr.mxu0 %v380_v27  ;;  %v363_v44 = vld [vmem:[#allocation8 + $0x30] sm:$0xff]  ;;  %v362_v45 = vld [vmem:[#allocation8 + $0x28] sm:$0xff]  ;;  %v361_v46 = vld [vmem:[#allocation8 + $0x20] sm:$0xff] }
  0x59   :  { %308 = vmatprep.subr.mxu1 %v263_v51  ;;  %442 = vmatpush1.msra.mxu0 %v379_v28  ;;  %v360_v47 = vld [vmem:[#allocation8 + $0x18] sm:$0xff]  ;;  %v359_v48 = vld [vmem:[#allocation8 + $0x10] sm:$0xff]  ;;  %v358_v49 = vld [vmem:[#allocation8 + $0x8] sm:$0xff] }
  0x5a   :  { %309 = vmatpush2.msra.mxu1 %v262_v52  ;;  %443 = vmatprep.subr.mxu0 %v378_v29  ;;  %v357_v50 = vld [vmem:[#allocation8] sm:$0xff]  ;;  %v420_v51 = vld [vmem:[#allocation8 + $0x1f8] sm:$0xff]  ;;  %v419_v52 = vld [vmem:[#allocation8 + $0x1f0] sm:$0xff] }
  0x5b   :  { %310 = vmatprep.subr.mxu1 %v261_v53  ;;  %444 = vmatpush1.msra.mxu0 %v377_v30  ;;  %v418_v53 = vld [vmem:[#allocation8 + $0x1e8] sm:$0xff]  ;;  %v396_v30 = vld [vmem:[#allocation8 + $0x138] sm:$0xff] }
  0x5c   :  { %311 = vmatpush2.msra.mxu1 %v260_v54  ;;  %445 = vmatprep.subr.mxu0 %v376_v31  ;;  %v417_v54 = vld [vmem:[#allocation8 + $0x1e0] sm:$0xff]  ;;  %v395_v31 = vld [vmem:[#allocation8 + $0x130] sm:$0xff] }
  0x5d   :  { %312 = vmatprep.subr.mxu1 %v259_v55  ;;  %446 = vmatpush1.msra.mxu0 %v375_v32  ;;  %v416_v55 = vld [vmem:[#allocation8 + $0x1d8] sm:$0xff]  ;;  %v394_v32 = vld [vmem:[#allocation8 + $0x128] sm:$0xff] }
  0x5e   :  { %313 = vmatpush2.msra.mxu1 %v258_v56  ;;  %447 = vmatprep.subr.mxu0 %v374_v33  ;;  %v415_v56 = vld [vmem:[#allocation8 + $0x1d0] sm:$0xff]  ;;  %v393_v33 = vld [vmem:[#allocation8 + $0x120] sm:$0xff] }
  0x5f   :  { %314 = vmatprep.subr.mxu1 %v257_v57  ;;  %448 = vmatpush1.msra.mxu0 %v373_v34  ;;  %v414_v57 = vld [vmem:[#allocation8 + $0x1c8] sm:$0xff]  ;;  %v392_v34 = vld [vmem:[#allocation8 + $0x118] sm:$0xff] }
  0x60   :  { %315 = vmatpush2.msra.mxu1 %v256_v58  ;;  %449 = vmatprep.subr.mxu0 %v372_v35  ;;  %v413_v58 = vld [vmem:[#allocation8 + $0x1c0] sm:$0xff]  ;;  %v391_v35 = vld [vmem:[#allocation8 + $0x110] sm:$0xff] }
  0x61   :  { %316 = vmatprep.subr.mxu1 %v255_v59  ;;  %450 = vmatpush1.msra.mxu0 %v371_v36  ;;  %v412_v59 = vld [vmem:[#allocation8 + $0x1b8] sm:$0xff]  ;;  %v390_v36 = vld [vmem:[#allocation8 + $0x108] sm:$0xff] }
  0x62   :  { %317 = vmatpush2.msra.mxu1 %v254_v60  ;;  %451 = vmatprep.subr.mxu0 %v370_v37  ;;  %v411_v60 = vld [vmem:[#allocation8 + $0x1b0] sm:$0xff]  ;;  %v389_v37 = vld [vmem:[#allocation8 + $0x100] sm:$0xff] }
  0x63   :  { %318 = vmatprep.subr.mxu1 %v253_v61  ;;  %452 = vmatpush1.msra.mxu0 %v369_v38  ;;  %v410_v61 = vld [vmem:[#allocation8 + $0x1a8] sm:$0xff]  ;;  %v264_v38 = vld [vmem:[%s781_s4] sm:$0x3] }
  0x64   :  { %319 = vmatpush2.msra.mxu1 %v252_v62  ;;  %453 = vmatprep.subr.mxu0 %v368_v39  ;;  %v409_v62 = vld [vmem:[#allocation8 + $0x1a0] sm:$0xff] }
  0x65   :  { %320 = vmatprep.subr.mxu1 %v251_v63  ;;  %454 = vmatpush1.msra.mxu0 %v367_v40  ;;  %v408_v63 = vld [vmem:[#allocation8 + $0x198] sm:$0xff] }
  0x66   :  { %321 = vmatpush2.msra.mxu1 %v250_v0  ;;  %455 = vmatprep.subr.mxu0 %v366_v41  ;;  %v407_v0 = vld [vmem:[#allocation8 + $0x190] sm:$0xff] }
  0x67   :  { %322 = vmatprep.subr.mxu1 %v249_v1  ;;  %456 = vmatpush1.msra.mxu0 %v365_v42  ;;  %v406_v1 = vld [vmem:[#allocation8 + $0x188] sm:$0xff] }
  0x68   :  { %323 = vmatpush2.msra.mxu1 %v248_v2  ;;  %457 = vmatprep.subr.mxu0 %v364_v43  ;;  %v405_v2 = vld [vmem:[#allocation8 + $0x180] sm:$0xff] }
  0x69   :  { %324 = vmatprep.subr.mxu1 %v247_v3  ;;  %458 = vmatpush1.msra.mxu0 %v363_v44  ;;  %v404_v3 = vld [vmem:[#allocation8 + $0x178] sm:$0xff] }
  0x6a   :  { %325 = vmatpush2.msra.mxu1 %v246_v4  ;;  %459 = vmatprep.subr.mxu0 %v362_v45  ;;  %v403_v4 = vld [vmem:[#allocation8 + $0x170] sm:$0xff] }
  0x6b   :  { %326 = vmatprep.subr.mxu1 %v245_v5  ;;  %460 = vmatpush1.msra.mxu0 %v361_v46  ;;  %v402_v5 = vld [vmem:[#allocation8 + $0x168] sm:$0xff] }
  0x6c   :  { %327 = vmatpush2.msra.mxu1 %v244_v6  ;;  %461 = vmatprep.subr.mxu0 %v360_v47  ;;  %v401_v6 = vld [vmem:[#allocation8 + $0x160] sm:$0xff] }
  0x6d   :  { %328 = vmatprep.subr.mxu1 %v243_v7  ;;  %462 = vmatpush1.msra.mxu0 %v359_v48  ;;  %v400_v7 = vld [vmem:[#allocation8 + $0x158] sm:$0xff] }
  0x6e   :  { %329 = vmatpush2.msra.mxu1 %v242_v8  ;;  %463 = vmatprep.subr.mxu0 %v358_v49  ;;  %v399_v8 = vld [vmem:[#allocation8 + $0x150] sm:$0xff] }
  0x6f   :  { %330 = vmatprep.subr.mxu1 %v241_v9  ;;  %464 = vmatpush1.msra.mxu0 %v357_v50  ;;  %v398_v9 = vld [vmem:[#allocation8 + $0x148] sm:$0xff] }
  0x70   :  { %331 = vmatpush2.msra.mxu1 %v240_v10  ;;  %465 = vmatprep.subr.mxu0 %v420_v51  ;;  %v397_v10 = vld [vmem:[#allocation8 + $0x140] sm:$0xff] }
  0x71   :  { %332 = vmatprep.subr.mxu1 %v239_v11  ;;  %466 = vmatpush2.msra.mxu0 %v419_v52  ;;  %v102_v11 = vlaneseq }
  0x72   :  { %333 = vmatpush2.msra.mxu1 %v238_v12  ;;  %467 = vmatprep.subr.mxu0 %v418_v53  ;;  %v421_v53 = vld [vmem:[%s783_s6] sm:$0x3]  ;;  %s698_s6 = smov [#allocation10]  }
  0x73   :  { %334 = vmatprep.subr.mxu1 %v237_v13  ;;  %468 = vmatpush2.msra.mxu0 %v417_v54  ;;  %v103_v12 = vshrl.u32 %v102_v11, 7  ;;  %s539_s25 = sshll.u32 %s698_s6, 4  ;;  %s540_s25 = int_to_ptr.vmem [resolvable:$true] %s539_s25 }
  0x74   :  { %335 = vmatpush2.msra.mxu1 %v236_v14  ;;  %469 = vmatprep.subr.mxu0 %v416_v55  ;;  %v100_v14 = vld [vmem:[%s779_s2] sm:$0x3]  ;;  %s661_s26 = scalar_lea.vmem %s540_s25, 512  ;;  %p666_p7 = scmp.lt.s32.totalorder %s540_s25, %s540_s25 }
  0x75   :  { %336 = vmatprep.subr.mxu1 %v235_v15  ;;  %470 = vmatpush2.msra.mxu0 %v415_v56  ;;  %v104_v13 = vsub.s32 0, %v103_v12  ;;  %v108_v15 = vsub.s32 1, %v103_v12  ;;  %p662_p6 = scmp.ne.s32.totalorder %s540_s25, %s661_s26  ;;  %p667_p8 = scmp.lt.s32.totalorder %s661_s26, %s661_s26 }
  0x76   :  { %337 = vmatpush2.msra.mxu1 %v234_v16  ;;  %471 = vmatprep.subr.mxu0 %v414_v57 }
  0x77   :  { %338 = vmatprep.subr.mxu1 %v233_v17  ;;  %472 = vmatpush2.msra.mxu0 %v413_v58  ;;  %v105_v16 = vrot.slane %v100_v14, %v104_v13  ;;  %v109_v17 = vrot.slane %v100_v14, %v108_v15  ;;  %v269_v39 = vrot.slane %v264_v38, %v104_v13  ;;  %p668_p9 = por %p667_p8, %p666_p7 }
  0x78   :  { %339 = vmatpush2.msra.mxu1 %v232_v18  ;;  %473 = vmatprep.subr.mxu0 %v412_v59  ;;  %v273_v40 = vrot.slane %v264_v38, %v108_v15  ;;  %v426_v54 = vrot.slane %v421_v53, %v104_v13  ;;  %v430_v55 = vrot.slane %v421_v53, %v108_v15 }
  0x79   :  { %474 = vmatpush2.msra.mxu0 %v411_v60  ;;  %p669_p10 = pnand %p668_p9, %p662_p6 }
  0x7a   :  { %475 = vmatprep.subr.mxu0 %v410_v61 }
  0x7b   :  { %476 = vmatpush2.msra.mxu0 %v409_v62 }
  0x7c   :  { %477 = vmatprep.subr.mxu0 %v408_v63 }
  0x7d   :  { %478 = vmatpush2.msra.mxu0 %v407_v0 }
  0x7e   :  { %479 = vmatprep.subr.mxu0 %v406_v1 }
  0x7f   :  { %480 = vmatpush2.msra.mxu0 %v405_v2 }
  0x80   :  { %481 = vmatprep.subr.mxu0 %v404_v3 }
  0x81   :  { %482 = vmatpush2.msra.mxu0 %v403_v4 }
  0x82   :  { %483 = vmatprep.subr.mxu0 %v402_v5 }
  0x83   :  { %484 = vmatpush2.msra.mxu0 %v401_v6 }
  0x84   :  { %485 = vmatprep.subr.mxu0 %v400_v7 }
  0x85   :  { %486 = vmatpush2.msra.mxu0 %v399_v8 }
  0x86   :  { %487 = vmatprep.subr.mxu0 %v398_v9 }
  0x87   :  { %488 = vmatpush2.msra.mxu0 %v397_v10 }
  0x88   :  { %489 = vmatprep.subr.mxu0 %v396_v30 }
  0x89   :  { %490 = vmatpush2.msra.mxu0 %v395_v31 }
  0x8a   :  { %491 = vmatprep.subr.mxu0 %v394_v32 }
  0x8b   :  { %492 = vmatpush2.msra.mxu0 %v393_v33 }
  0x8c   :  { %493 = vmatprep.subr.mxu0 %v392_v34 }
  0x8d   :  { %494 = vmatpush2.msra.mxu0 %v391_v35 }
  0x8e   :  { %495 = vmatprep.subr.mxu0 %v390_v36 }
  0x8f   :  { %496 = vmatpush2.msra.mxu0 %v389_v37 }
 0x105   :  { %v185_v18 = vpop.f32.mrf.mxu0 }
 0x106   :  { %v186_v19 = vadd.f32 %v185_v18, %v105_v16 }
 0x107   :  { %v187_v20 = vpop.f32.mrf.mxu0 }
 0x108   :  { %v188_v21 = vadd.f32 %v187_v20, %v109_v17  ;;  %v196_v24 = vmax.f32 %v186_v19, 0.0 }
 0x109   :  { %v191_v22 = vpop.f32.mrf.mxu0 }
 0x10a   :  { %v197_v23 = vmax.f32 %v188_v21, 0.0  ;;  %v192_v25 = vadd.f32 %v191_v22, %v105_v16 }
 0x10b   :  { %v193_v26 = vpop.f32.mrf.mxu0 }
 0x10c   :  { %v194_v27 = vadd.f32 %v193_v26, %v109_v17  ;;  %340 = vmatprep.mubr.f32.mxu1 %v197_v23  ;;  %v198_v29 = vmax.f32 %v192_v25, 0.0 }
 0x10d   :  { %341 = vmatmul.mubr.f32.vlgmr.msra.gmra.mxu1 %v196_v24 }
 0x10e   :  { %v199_v28 = vmax.f32 %v194_v27, 0.0 }
 0x110   :  { %346 = vmatprep.mubr.f32.mxu1 %v199_v28 }
 0x111   :  { %347 = vmatmul.mubr.f32.gmra.mxu1 %v198_v29 }
 0x1cd   :  { %v342_v41 = vpop.f32.mrf.mxu1 }
 0x1ce   :  { %v343_v42 = vadd.f32 %v342_v41, %v269_v39 }
 0x1cf   :  { %v344_v43 = vpop.f32.mrf.mxu1 }
 0x1d0   :  { %v345_v44 = vadd.f32 %v344_v43, %v273_v40  ;;  %v353_v47 = vmax.f32 %v343_v42, 0.0 }
 0x1d1   :  { %v348_v45 = vpop.f32.mrf.mxu1 }
 0x1d2   :  { %v354_v46 = vmax.f32 %v345_v44, 0.0  ;;  %v349_v48 = vadd.f32 %v348_v45, %v269_v39 }
 0x1d3   :  { %v350_v49 = vpop.f32.mrf.mxu1 }
 0x1d4   :  { %v351_v50 = vadd.f32 %v350_v49, %v273_v40  ;;  %497 = vmatprep.mubr.f32.mxu0 %v354_v46  ;;  %v355_v52 = vmax.f32 %v349_v48, 0.0 }
 0x1d5   :  { %498 = vmatmul.mubr.f32.vlgmr.msra.gmra.mxu0 %v353_v47 }
 0x1d6   :  { %v356_v51 = vmax.f32 %v351_v50, 0.0 }
 0x1d8   :  { %503 = vmatprep.mubr.f32.mxu0 %v356_v51 }
 0x1d9   :  { %504 = vmatmul.mubr.f32.gmra.mxu0 %v355_v52 }
 0x295   :  { %v499_v56 = vpop.f32.mrf.mxu0 }
 0x296   :  { %v500_v57 = vadd.f32 %v499_v56, %v426_v54 }
 0x297   :  { %v501_v58 = vpop.f32.mrf.mxu0 }
 0x298   :  { %v510_v59 = vsub.f32 0.0, %v500_v57  ;;  %v502_v60 = vadd.f32 %v501_v58, %v430_v55 }
 0x299   :  { %v505_v61 = vpop.f32.mrf.mxu0 }
 0x29a   :  { %v514_v62 = vmul.f32 1.442695, %v510_v59  ;;  %v511_v63 = vsub.f32 0.0, %v502_v60  ;;  %v506_v0 = vadd.f32 %v505_v61, %v426_v54 }
 0x29b   :  { %v507_v1 = vpop.f32.mrf.mxu0 }
 0x29c   :  { %565 = vpow2.f32 %v514_v62  ;;  %v516_v2 = vmul.f32 1.442695, %v511_v63  ;;  %v512_v3 = vsub.f32 0.0, %v506_v0  ;;  %v508_v4 = vadd.f32 %v507_v1, %v430_v55 }
 0x29e   :  { %567 = vpow2.f32 %v516_v2  ;;  %v518_v5 = vmul.f32 1.442695, %v512_v3  ;;  %v513_v6 = vsub.f32 0.0, %v508_v4 }
 0x2a0   :  { %569 = vpow2.f32 %v518_v5  ;;  %v520_v7 = vmul.f32 1.442695, %v513_v6 }
 0x2a2   :  { %571 = vpow2.f32 %v520_v7 }
 0x2a9   :  { %v566_v8 = vpop.eup %565 }
 0x2aa   :  { %v522_v9 = vadd.f32 1.0, %v566_v8 }
 0x2ab   :  { %v568_v10 = vpop.eup %567 }
 0x2ac   :  { %573 = vrcp.f32 %v522_v9  ;;  %v523_v11 = vadd.f32 1.0, %v568_v10 }
 0x2ad   :  { %v570_v12 = vpop.eup %569 }
 0x2ae   :  { %575 = vrcp.f32 %v523_v11  ;;  %v524_v13 = vadd.f32 1.0, %v570_v12 }
 0x2af   :  { %v572_v14 = vpop.eup %571 }
 0x2b0   :  { %577 = vrcp.f32 %v524_v13  ;;  %v525_v15 = vadd.f32 1.0, %v572_v14 }
 0x2b2   :  { %579 = vrcp.f32 %v525_v15 }
 0x2b9   :  { %v574_v16 = vpop.eup %573 }
 0x2ba   :  { %530 = vst [vmem:[#allocation10] sm:$0xff] %v574_v16 }
 0x2bb   :  { %v576_v17 = vpop.eup %575 }
 0x2bc   :  { %531 = vst [vmem:[#allocation10 + $0x8] sm:$0xff] %v576_v17 }
 0x2bd   :  { %v578_v18 = vpop.eup %577 }
 0x2be   :  { %532 = vst [vmem:[#allocation10 + $0x10] sm:$0xff] %v578_v18 }
 0x2bf   :  { %v580_v19 = vpop.eup %579 }
 0x2c0   :  { %533 = vst [vmem:[#allocation10 + $0x18] sm:$0xff] %v580_v19 }
 0x2c1   :  { %672 = shalt.err (!%p669_p10)
}
 0x2c2   :  { %545 = dma.vmem_to_hbm [thread:$0]  %s540_s25, 512, %s784_s7, [#allocation4], %s690_s27, %s690_s27, %s691_s28  }
 0x2c3   :  { %687 = dma.done.wait [#allocation4], 512  }
 0x2c4   :  { %688 = vsyncadd [#allocation4], 4294966784 }
 0x2c5   :  { %549 = vsyncpa [#allocation3], 1 }
 0x2c6   :  { %550 = vsyncpa [#allocation6], 1 }
 0x2c7   :  { %551 = vsyncpa [#allocation9], 1 }
 0x2c8   :  { %552 = vsyncpa [#allocation4], 1 }

</bundles_post_ra>
